<compile_context>
chip_gen: v6e
topology: v6e:2x2x1
jax: 0.10.0
libtpu: 0.0.40
codegen_flags: <defaults>
</compile_context>

<pallas_src>
import jax
import jax.numpy as jnp
from jax.experimental import pallas as pl
from jax.experimental.pallas import tpu as pltpu

FEAT = 2048          # resnet.fc in_features (fixed by the module)
HID0 = 512           # resnet.fc out_features
HID1 = 256           # fc1 out_features
NUM_CLASSES = 100    # num_classes (free parameter of the module)


def head_kernel(x_ref, w0_ref, b0_ref, w1_ref, b1_ref, w2_ref, b2_ref, o_ref):
    # x_ref: (block_b, 2048) bf16 pooled features; weights bf16; biases f32.
    # All matmuls are bf16 x bf16 with f32 accumulation (single MXU pass).
    feat = x_ref[...]

    # resnet.fc: Linear(2048 -> 512) -- ResNet applies no activation after fc.
    h0 = jnp.dot(feat, w0_ref[...], preferred_element_type=jnp.float32) + b0_ref[...]

    # fc1 + ReLU
    h1 = jnp.dot(h0.astype(jnp.bfloat16), w1_ref[...],
                 preferred_element_type=jnp.float32) + b1_ref[...]
    h1 = jnp.maximum(h1, 0.0)

    # fc2 + Sigmoid (exact; EUP/VPU are not the bottleneck here)
    h2 = jnp.dot(h1.astype(jnp.bfloat16), w2_ref[...],
                 preferred_element_type=jnp.float32) + b2_ref[...]
    o_ref[...] = 1.0 / (1.0 + jnp.exp(-h2))


def _plan_batch(batch):
    """Return (block_b, padded_batch).

    block_b is a multiple of 8 (sublane / (8,128) block constraint), capped at
    512 rows, and the grid has >= 2 steps once the batch is big enough so the
    "parallel" axis can shard across both TensorCores on v7x.
    """
    if batch <= 8:
        return 8, 8
    block = min(512, ((batch + 1) // 2 + 7) // 8 * 8)
    padded = ((batch + block - 1) // block) * block
    if padded // block < 2:
        padded += block
    return block, padded


def perceptron_multilabel_resnet_head(x_nchw, params):
    """x_nchw: (B, 2048, H, W) float32 backbone conv features. Returns (B, num_classes)."""
    B, C, H, W = x_nchw.shape
    assert C == FEAT

    # Adaptive avg-pool in XLA: fuses into the backbone epilogue and reads x exactly
    # once, instead of the kernel re-streaming B*2048*H*W from HBM (and instead of a
    # separate NCHW->NHWC relayout pass that would triple the feature traffic).
    feat = jnp.mean(x_nchw, axis=(2, 3))            # (B, 2048) f32
    feat = feat.astype(jnp.bfloat16)                # halve the kernel's input stream

    w0, b0, w1, b1, w2, b2 = params
    num_classes = w2.shape[1]

    # Pad class dim to a multiple of 128 for unmasked lane-dense stores.
    c_pad = ((num_classes + 127) // 128) * 128
    if c_pad != num_classes:
        w2 = jnp.pad(w2, ((0, 0), (0, c_pad - num_classes)))
        b2 = jnp.pad(b2, ((0, 0), (0, c_pad - num_classes)))

    # Weights stream as bf16 (matmuls run bf16 x bf16 with f32 accumulation).
    w0 = w0.astype(jnp.bfloat16)
    w1 = w1.astype(jnp.bfloat16)
    w2 = w2.astype(jnp.bfloat16)

    block_b, b_pad = _plan_batch(B)
    if b_pad != B:
        feat = jnp.pad(feat, ((0, b_pad - B), (0, 0)))
    grid = (b_pad // block_b,)

    def resident(shape):
        zeros = (0,) * len(shape)
        return pl.BlockSpec(shape, lambda i, zeros=zeros: zeros)

    # VMEM: double-buffered feat/out tiles + resident weights (2 buffers worst case).
    vmem_bytes = int(
        2 * block_b * FEAT * 2                        # bf16 feat tile x2
        + 2 * (w0.size + w1.size + w2.size) * 2       # bf16 weights x2
        + 2 * (b0.size + b1.size + b2.size) * 4       # f32 biases x2
        + 2 * block_b * c_pad * 4                     # f32 output tile x2
    )
    vmem_bytes = min(max(int(vmem_bytes * 1.25) + (1 << 20), 16 << 20), 48 << 20)

    flops = 2 * b_pad * (FEAT * HID0 + HID0 * HID1 + HID1 * c_pad)
    bytes_accessed = (
        feat.size * 2
        + (w0.size + w1.size + w2.size) * 2
        + (b0.size + b1.size + b2.size) * 4
        + b_pad * c_pad * 4
    )
    cost = pl.CostEstimate(
        flops=flops, transcendentals=b_pad * c_pad, bytes_accessed=bytes_accessed
    )

    out = pl.pallas_call(
        head_kernel,
        out_shape=jax.ShapeDtypeStruct((b_pad, c_pad), jnp.float32),
        grid=grid,
        in_specs=[
            pl.BlockSpec((block_b, FEAT), lambda i: (i, 0)),
            resident(w0.shape), resident(b0.shape),
            resident(w1.shape), resident(b1.shape),
            resident(w2.shape), resident(b2.shape),
        ],
        out_specs=pl.BlockSpec((block_b, c_pad), lambda i: (i, 0)),
        compiler_params=pltpu.CompilerParams(
            dimension_semantics=("parallel",),
            vmem_limit_bytes=vmem_bytes,
        ),
        cost_estimate=cost,
    )(feat, w0, b0, w1, b1, w2, b2)

    return out[:B, :num_classes]


def init_linear(key, fan_in, fan_out):
    """PyTorch-Linear-style init; weight stored as (in, out), pre-rounded through bf16
    so the f32 reference and the kernel's bf16 weights hold identical values."""
    kw, kb = jax.random.split(key)
    bound = 1.0 / jnp.sqrt(jnp.float32(fan_in))
    w = jax.random.uniform(kw, (fan_in, fan_out), jnp.float32, -bound, bound)
    w = w.astype(jnp.bfloat16).astype(jnp.float32)
    b = jax.random.uniform(kb, (1, fan_out), jnp.float32, -bound, bound)
    return w, b


def reference_forward(x_nchw, params):
    w0, b0, w1, b1, w2, b2 = params
    feat = jnp.mean(x_nchw, axis=(2, 3))
    h0 = feat @ w0 + b0
    h1 = jnp.maximum(h0 @ w1 + b1, 0.0)
    return jax.nn.sigmoid(h1 @ w2 + b2)


if __name__ == "__main__":
    key = jax.random.PRNGKey(0)
    kx, k0, k1, k2 = jax.random.split(key, 4)

    # Small spatial size (ResNet's adaptive avgpool accepts any H, W); the channel
    # count is fixed at 2048 by the module's resnet.fc definition.
    B, H, W = 2, 4, 4
    x = jax.random.normal(kx, (B, FEAT, H, W), jnp.float32)

    w0, b0 = init_linear(k0, FEAT, HID0)          # resnet.fc : 2048 -> 512
    w1, b1 = init_linear(k1, HID0, HID1)          # fc1       : 512  -> 256
    w2, b2 = init_linear(k2, HID1, NUM_CLASSES)   # fc2       : 256  -> num_classes
    params = (w0, b0, w1, b1, w2, b2)

    out = perceptron_multilabel_resnet_head(x, params)
    out = jax.block_until_ready(out)

    ref = reference_forward(x, params)
    assert out.shape == (B, NUM_CLASSES)
    assert jnp.allclose(out, ref, atol=5e-3, rtol=5e-3), float(jnp.max(jnp.abs(out - ref)))

    print("KERNEL_OK")
</pallas_src>

<mosaic_0001>
module attributes {stable_mosaic.version = 11 : i64} {
  func.func @head_kernel(%arg0: i32, %arg1: memref<8x2048xbf16, #tpu.memory_space<vmem>>, %arg2: memref<2048x512xbf16, #tpu.memory_space<vmem>>, %arg3: memref<1x512xf32, #tpu.memory_space<vmem>>, %arg4: memref<512x256xbf16, #tpu.memory_space<vmem>>, %arg5: memref<1x256xf32, #tpu.memory_space<vmem>>, %arg6: memref<256x128xbf16, #tpu.memory_space<vmem>>, %arg7: memref<1x128xf32, #tpu.memory_space<vmem>>, %arg8: memref<8x128xf32, #tpu.memory_space<vmem>>) attributes {dimension_semantics = [#tpu.dimension_semantics<parallel>], iteration_bounds = array<i64: 1>, scalar_prefetch = 0 : i64, scratch_operands = 0 : i64, tpu.core_type = #tpu.core_type<tc>, window_params = [{transform_indices = @transform_0, window_bounds = array<i64: 8, 2048>}, {pipeline_mode = #tpu.pipeline_mode<synchronous>, transform_indices = @transform_1, window_bounds = array<i64: 2048, 512>}, {pipeline_mode = #tpu.pipeline_mode<synchronous>, transform_indices = @transform_2, window_bounds = array<i64: 1, 512>}, {pipeline_mode = #tpu.pipeline_mode<synchronous>, transform_indices = @transform_3, window_bounds = array<i64: 512, 256>}, {pipeline_mode = #tpu.pipeline_mode<synchronous>, transform_indices = @transform_4, window_bounds = array<i64: 1, 256>}, {pipeline_mode = #tpu.pipeline_mode<synchronous>, transform_indices = @transform_5, window_bounds = array<i64: 256, 128>}, {pipeline_mode = #tpu.pipeline_mode<synchronous>, transform_indices = @transform_6, window_bounds = array<i64: 1, 128>}, {transform_indices = @transform_7, window_bounds = array<i64: 8, 128>}]} {
    %c0 = arith.constant 0 : index
    %c0_0 = arith.constant 0 : index
    %0 = vector.load %arg1[%c0, %c0_0] : memref<8x2048xbf16, #tpu.memory_space<vmem>>, vector<8x2048xbf16>
    %c0_1 = arith.constant 0 : index
    %c0_2 = arith.constant 0 : index
    %1 = vector.load %arg2[%c0_1, %c0_2] : memref<2048x512xbf16, #tpu.memory_space<vmem>>, vector<2048x512xbf16>
    %cst = arith.constant dense<0.000000e+00> : vector<8x512xf32>
    %2 = tpu.matmul %0, %1, %cst {dimension_numbers = #tpu.dot_dimension_numbers<[1], [0], [0], [1], [0, 0, 1, 1], [], []>} : vector<8x2048xbf16>, vector<2048x512xbf16>, vector<8x512xf32> -> vector<8x512xf32>
    %c0_3 = arith.constant 0 : index
    %c0_4 = arith.constant 0 : index
    %3 = vector.load %arg3[%c0_3, %c0_4] : memref<1x512xf32, #tpu.memory_space<vmem>>, vector<1x512xf32>
    %4 = vector.broadcast %3 : vector<1x512xf32> to vector<8x512xf32>
    %5 = arith.addf %2, %4 : vector<8x512xf32>
    %6 = arith.truncf %5 : vector<8x512xf32> to vector<8x512xbf16>
    %c0_5 = arith.constant 0 : index
    %c0_6 = arith.constant 0 : index
    %7 = vector.load %arg4[%c0_5, %c0_6] : memref<512x256xbf16, #tpu.memory_space<vmem>>, vector<512x256xbf16>
    %cst_7 = arith.constant dense<0.000000e+00> : vector<8x256xf32>
    %8 = tpu.matmul %6, %7, %cst_7 {dimension_numbers = #tpu.dot_dimension_numbers<[1], [0], [0], [1], [0, 0, 1, 1], [], []>} : vector<8x512xbf16>, vector<512x256xbf16>, vector<8x256xf32> -> vector<8x256xf32>
    %c0_8 = arith.constant 0 : index
    %c0_9 = arith.constant 0 : index
    %9 = vector.load %arg5[%c0_8, %c0_9] : memref<1x256xf32, #tpu.memory_space<vmem>>, vector<1x256xf32>
    %10 = vector.broadcast %9 : vector<1x256xf32> to vector<8x256xf32>
    %11 = arith.addf %8, %10 : vector<8x256xf32>
    %cst_10 = arith.constant 0.000000e+00 : f32
    %12 = vector.broadcast %cst_10 : f32 to vector<8x256xf32>
    %13 = arith.maximumf %11, %12 : vector<8x256xf32>
    %14 = arith.truncf %13 : vector<8x256xf32> to vector<8x256xbf16>
    %c0_11 = arith.constant 0 : index
    %c0_12 = arith.constant 0 : index
    %15 = vector.load %arg6[%c0_11, %c0_12] : memref<256x128xbf16, #tpu.memory_space<vmem>>, vector<256x128xbf16>
    %cst_13 = arith.constant dense<0.000000e+00> : vector<8x128xf32>
    %16 = tpu.matmul %14, %15, %cst_13 {dimension_numbers = #tpu.dot_dimension_numbers<[1], [0], [0], [1], [0, 0, 1, 1], [], []>} : vector<8x256xbf16>, vector<256x128xbf16>, vector<8x128xf32> -> vector<8x128xf32>
    %c0_14 = arith.constant 0 : index
    %c0_15 = arith.constant 0 : index
    %17 = vector.load %arg7[%c0_14, %c0_15] : memref<1x128xf32, #tpu.memory_space<vmem>>, vector<1x128xf32>
    %18 = vector.broadcast %17 : vector<1x128xf32> to vector<8x128xf32>
    %19 = arith.addf %16, %18 : vector<8x128xf32>
    %cst_16 = arith.constant 0.000000e+00 : f32
    %20 = vector.broadcast %cst_16 : f32 to vector<8x128xf32>
    %21 = arith.subf %20, %19 : vector<8x128xf32>
    %22 = math.exp %21 : vector<8x128xf32>
    %cst_17 = arith.constant 1.000000e+00 : f32
    %23 = vector.broadcast %cst_17 : f32 to vector<8x128xf32>
    %24 = arith.addf %23, %22 : vector<8x128xf32>
    %cst_18 = arith.constant 1.000000e+00 : f32
    %25 = vector.broadcast %cst_18 : f32 to vector<8x128xf32>
    %26 = arith.divf %25, %24 : vector<8x128xf32>
    %c0_19 = arith.constant 0 : index
    %c0_20 = arith.constant 0 : index
    %27 = vector.load %arg8[%c0_19, %c0_20] : memref<8x128xf32, #tpu.memory_space<vmem>>, vector<8x128xf32>
    tpu.vector_store %arg8[%c0_19, %c0_20], %26 {strides = array<i32>} : memref<8x128xf32, #tpu.memory_space<vmem>>, vector<8x128xf32>,
    return
  }
  func.func @transform_0(%arg0: i32) -> (i32, i32) {
    %c0_i32 = arith.constant 0 : i32
    %c0_i32_0 = arith.constant 0 : i32
    return %arg0, %c0_i32 : i32, i32
  }
  func.func @transform_1(%arg0: i32) -> (i32, i32) {
    %c0_i32 = arith.constant 0 : i32
    %c0_i32_0 = arith.constant 0 : i32
    %c0_i32_1 = arith.constant 0 : i32
    return %c0_i32, %c0_i32_0 : i32, i32
  }
  func.func @transform_2(%arg0: i32) -> (i32, i32) {
    %c0_i32 = arith.constant 0 : i32
    %c0_i32_0 = arith.constant 0 : i32
    %c0_i32_1 = arith.constant 0 : i32
    return %c0_i32, %c0_i32_0 : i32, i32
  }
  func.func @transform_3(%arg0: i32) -> (i32, i32) {
    %c0_i32 = arith.constant 0 : i32
    %c0_i32_0 = arith.constant 0 : i32
    %c0_i32_1 = arith.constant 0 : i32
    return %c0_i32, %c0_i32_0 : i32, i32
  }
  func.func @transform_4(%arg0: i32) -> (i32, i32) {
    %c0_i32 = arith.constant 0 : i32
    %c0_i32_0 = arith.constant 0 : i32
    %c0_i32_1 = arith.constant 0 : i32
    return %c0_i32, %c0_i32_0 : i32, i32
  }
  func.func @transform_5(%arg0: i32) -> (i32, i32) {
    %c0_i32 = arith.constant 0 : i32
    %c0_i32_0 = arith.constant 0 : i32
    %c0_i32_1 = arith.constant 0 : i32
    return %c0_i32, %c0_i32_0 : i32, i32
  }
  func.func @transform_6(%arg0: i32) -> (i32, i32) {
    %c0_i32 = arith.constant 0 : i32
    %c0_i32_0 = arith.constant 0 : i32
    %c0_i32_1 = arith.constant 0 : i32
    return %c0_i32, %c0_i32_0 : i32, i32
  }
  func.func @transform_7(%arg0: i32) -> (i32, i32) {
    %c0_i32 = arith.constant 0 : i32
    %c0_i32_0 = arith.constant 0 : i32
    return %arg0, %c0_i32 : i32, i32
  }
}

</mosaic_0001>

<bundles_post_ra>
// kernel: tpu_custom_call.1
= control target key start
LH: loop header
LB: loop body
LE: loop exit
PB: predicated region body
PF: predicated region fallthrough
CT: control target
= control target key end

     0   :  { %12 = vsyncpa [#allocation3], 0  ;;  %s6557_s0 = inlined_call_operand.hbm [shape: bf16[8,2048], index: 0, kind: input, shape index: {}]   ;;  %s6558_s1 = inlined_call_operand.hbm [shape: bf16[2048,512], index: 1, kind: input, shape index: {}]   ;;  %s6559_s2 = inlined_call_operand.hbm [shape: f32[1,512], index: 2, kind: input, shape index: {}]   ;;  %s6560_s3 = inlined_call_operand.hbm [shape: bf16[512,256], index: 3, kind: input, shape index: {}]   ;;  %s6561_s4 = inlined_call_operand.hbm [shape: f32[1,256], index: 4, kind: input, shape index: {}]   ;;  %s6562_s5 = inlined_call_operand.hbm [shape: bf16[256,128], index: 5, kind: input, shape index: {}]   ;;  %s6563_s6 = inlined_call_operand.hbm [shape: f32[1,128], index: 6, kind: input, shape index: {}]   ;;  %s6564_s7 = inlined_call_operand.hbm [shape: f32[8,128], index: 7, kind: output, shape index: {}]  }
   0x1   :  { %13 = vsyncpa [#allocation6], 0 }
   0x2   :  { %14 = vsyncpa [#allocation9], 0 }
   0x3   :  { %15 = vsyncpa [#allocation12], 0 }
   0x4   :  { %16 = vsyncpa [#allocation4], 0  ;;  %s6331_s24 = smov [#allocation5]  }
   0x5   :  { %s32_s25 = sshll.u32 %s6331_s24, 4  ;;  %s33_s25 = int_to_ptr.vmem [resolvable:$true] %s32_s25 }
   0x6   :  { %s6169_s26 = scalar_lea.vmem %s33_s25, 65536  ;;  %p6174_p1 = scmp.lt.s32.totalorder %s33_s25, %s33_s25 }
   0x7   :  { %p6170_p0 = scmp.ne.s32.totalorder %s33_s25, %s6169_s26  ;;  %p6175_p2 = scmp.lt.s32.totalorder %s6169_s26, %s6169_s26 }
   0x9   :  { %p6176_p3 = por %p6175_p2, %p6174_p1 }
   0xb   :  { %p6177_p4 = pnand %p6176_p3, %p6170_p0 }
   0xd   :  { %6180 = shalt.err (!%p6177_p4)
}
   0xe   :  { %s6332_s27 = smov 256   ;;  %s6333_s28 = smov 16  }
   0xf   :  { %38 = dma.hbm_to_vmem [thread:$0]  %s6558_s1, 65536, %s33_s25, [#allocation6], %s6332_s27, %s6332_s27, %s6333_s28  }
  0x10   :  { %s6334_s8 = smov [#allocation8]  }
  0x11   :  { %s54_s9 = sshll.u32 %s6334_s8, 4  ;;  %s55_s9 = int_to_ptr.vmem [resolvable:$true] %s54_s9 }
  0x12   :  { %s6189_s10 = scalar_lea.vmem %s55_s9, 8192  ;;  %p6194_p6 = scmp.lt.s32.totalorder %s55_s9, %s55_s9 }
  0x13   :  { %p6190_p5 = scmp.ne.s32.totalorder %s55_s9, %s6189_s10  ;;  %p6195_p7 = scmp.lt.s32.totalorder %s6189_s10, %s6189_s10 }
  0x15   :  { %p6196_p8 = por %p6195_p7, %p6194_p6 }
  0x17   :  { %p6197_p9 = pnand %p6196_p8, %p6190_p5 }
  0x19   :  { %6200 = shalt.err (!%p6197_p9)
}
  0x1a   :  { %s6335_s11 = smov 128   ;;  %s6336_s12 = smov 8  }
  0x1b   :  { %60 = dma.hbm_to_vmem [thread:$0]  %s6560_s3, 8192, %s55_s9, [#allocation9], %s6335_s11, %s6335_s11, %s6336_s12  }
  0x1c   :  { %s6337_s15 = smov [#allocation11]  }
  0x1d   :  { %s76_s16 = sshll.u32 %s6337_s15, 4  ;;  %s77_s16 = int_to_ptr.vmem [resolvable:$true] %s76_s16 }
  0x1e   :  { %s6209_s1 = scalar_lea.vmem %s77_s16, 2048  ;;  %p6214_p11 = scmp.lt.s32.totalorder %s77_s16, %s77_s16 }
  0x1f   :  { %p6210_p10 = scmp.ne.s32.totalorder %s77_s16, %s6209_s1  ;;  %p6215_p12 = scmp.lt.s32.totalorder %s6209_s1, %s6209_s1 }
  0x21   :  { %p6216_p13 = por %p6215_p12, %p6214_p11 }
  0x23   :  { %p6217_p0 = pnand %p6216_p13, %p6210_p10 }
  0x25   :  { %6220 = shalt.err (!%p6217_p0)
}
  0x26   :  { %s6338_s17 = smov 64   ;;  %s6339_s18 = smov 4  }
  0x27   :  { %82 = dma.hbm_to_vmem [thread:$0]  %s6562_s5, 2048, %s77_s16, [#allocation12], %s6338_s17, %s6338_s17, %s6339_s18  }
  0x28   :  { %s6340_s21 = smov [#allocation2]   ;;  %s6341_s3 = smov [#allocation7]  }
  0x29   :  { %s23_s22 = sshll.u32 %s6340_s21, 4  ;;  %s45_s23 = sshll.u32 %s6341_s3, 4  ;;  %s24_s22 = int_to_ptr.vmem [resolvable:$true] %s23_s22  ;;  %s46_s23 = int_to_ptr.vmem [resolvable:$true] %s45_s23 }
  0x2a   :  { %s6229_s24 = scalar_lea.vmem %s24_s22, 1024  ;;  %p6234_p2 = scmp.lt.s32.totalorder %s24_s22, %s24_s22 }
  0x2b   :  { %p6230_p1 = scmp.ne.s32.totalorder %s24_s22, %s6229_s24  ;;  %p6235_p3 = scmp.lt.s32.totalorder %s6229_s24, %s6229_s24 }
  0x2d   :  { %p6236_p4 = por %p6235_p3, %p6234_p2 }
  0x2f   :  { %p6237_p5 = pnand %p6236_p4, %p6230_p1 }
  0x31   :  { %6240 = shalt.err (!%p6237_p5)
}
  0x32   :  { %26 = dma.hbm_to_vmem [thread:$0]  %s6557_s0, 1024, %s24_s22, [#allocation3]  }
  0x33   :  { %s6249_s27 = scalar_lea.vmem %s46_s23, 64  ;;  %p6254_p7 = scmp.lt.s32.totalorder %s46_s23, %s46_s23 }
  0x34   :  { %p6250_p6 = scmp.ne.s32.totalorder %s46_s23, %s6249_s27  ;;  %p6255_p8 = scmp.lt.s32.totalorder %s6249_s27, %s6249_s27 }
  0x36   :  { %p6256_p9 = por %p6255_p8, %p6254_p7 }
  0x38   :  { %p6257_p10 = pnand %p6256_p9, %p6250_p6 }
  0x3a   :  { %6260 = shalt.err (!%p6257_p10)
}
  0x3b   :  { %48 = dma.hbm_to_vmem [thread:$0]  %s6559_s2, 64, %s46_s23, [#allocation6]  }
  0x3c   :  { %s6342_s29 = smov [#allocation10]   ;;  %s6343_s8 = smov [#allocation13]  }
  0x3d   :  { %s67_s30 = sshll.u32 %s6342_s29, 4  ;;  %s89_s9 = sshll.u32 %s6343_s8, 4  ;;  %s68_s30 = int_to_ptr.vmem [resolvable:$true] %s67_s30  ;;  %s90_s9 = int_to_ptr.vmem [resolvable:$true] %s89_s9 }
  0x3e   :  { %s6269_s10 = scalar_lea.vmem %s68_s30, 32  ;;  %p6274_p12 = scmp.lt.s32.totalorder %s68_s30, %s68_s30 }
  0x3f   :  { %p6270_p11 = scmp.ne.s32.totalorder %s68_s30, %s6269_s10  ;;  %p6275_p13 = scmp.lt.s32.totalorder %s6269_s10, %s6269_s10 }
  0x41   :  { %p6276_p0 = por %p6275_p13, %p6274_p12 }
  0x43   :  { %p6277_p1 = pnand %p6276_p0, %p6270_p11 }
  0x45   :  { %6280 = shalt.err (!%p6277_p1)
}
  0x46   :  { %70 = dma.hbm_to_vmem [thread:$0]  %s6561_s4, 32, %s68_s30, [#allocation9]  }
  0x47   :  { %s6289_s12 = scalar_lea.vmem %s90_s9, 16  ;;  %s6293_s2 = scalar_lea.vmem %s90_s9, 32 }
  0x48   :  { %p6290_p2 = scmp.ne.s32.totalorder %s90_s9, %s6289_s12  ;;  %p6294_p3 = scmp.lt.s32.totalorder %s90_s9, %s90_s9 }
  0x49   :  { %p6295_p4 = scmp.lt.s32.totalorder %s6293_s2, %s6289_s12 }
  0x4b   :  { %p6296_p5 = por %p6295_p4, %p6294_p3 }
  0x4d   :  { %p6297_p6 = pnand %p6296_p5, %p6290_p2 }
  0x4f   :  { %6300 = shalt.err (!%p6297_p6)
}
  0x50   :  { %92 = dma.hbm_to_vmem [thread:$0]  %s6563_s6, 16, %s90_s9, [#allocation12]  }
  0x51   :  { %6321 = dma.done.wait [#allocation3], 1024  }
  0x52   :  { %6322 = vsyncadd [#allocation3], 4294966272 }
  0x53   :  { %6323 = dma.done.wait [#allocation6], 65600  }
  0x54   :  { %6324 = vsyncadd [#allocation6], 4294901696 }
  0x55   :  { %6325 = dma.done.wait [#allocation9], 8224  }
  0x56   :  { %6326 = vsyncadd [#allocation9], 4294959072 }
  0x57   :  { %6327 = dma.done.wait [#allocation12], 2064  }
  0x58   :  { %6328 = vsyncadd [#allocation12], 4294965232  ;;  %v5260_v0 = vld [vmem:[#allocation5 + $0xe4] ss:$16 sps:$4 sm:$0xff]   ;;  %v5264_v2 = vld [vmem:[#allocation5 + $0xe0] ss:$16 sps:$4 sm:$0xff]  }
  0x59   :  { %v5262_v1 = vld [vmem:[#allocation5 + $0x2e4] ss:$16 sps:$4 sm:$0xff]   ;;  %3273 = vmatprep.subr.bf16.mxu0 %v5260_v0  ;;  %v5265_v3 = vld [vmem:[#allocation5 + $0x2e0] ss:$16 sps:$4 sm:$0xff]   ;;  %v116_v48 = vld [vmem:[#allocation2 + $0x8] sm:$0xff]  ;;  %s6344_s4 = smov [#allocation14]  }
  0x5a   :  { %3314 = vmatprep.subr.bf16.mxu1 %v5262_v1  ;;  %v5266_v4 = vld [vmem:[#allocation5 + $0xc4] ss:$16 sps:$4 sm:$0xff]   ;;  %3274 = vmatpush1.bf16.msra.mxu0 %v5264_v2  ;;  %v5270_v6 = vld [vmem:[#allocation5 + $0xc0] ss:$16 sps:$4 sm:$0xff]   ;;  %v6408_v51 = vcombine.high %v116_v48, %v116_v48  ;;  %s4603_s6 = sshll.u32 %s6344_s4, 4  ;;  %s4604_s6 = int_to_ptr.vmem [resolvable:$true] %s4603_s6 }
  0x5b   :  { %3315 = vmatpush1.bf16.msra.mxu1 %v5265_v3  ;;  %v5268_v5 = vld [vmem:[#allocation5 + $0x2c4] ss:$16 sps:$4 sm:$0xff]   ;;  %3275 = vmatprep.subr.bf16.mxu0 %v5266_v4  ;;  %v5271_v7 = vld [vmem:[#allocation5 + $0x2c0] ss:$16 sps:$4 sm:$0xff]   ;;  %s6301_s15 = scalar_lea.vmem %s4604_s6, 128  ;;  %p6306_p8 = scmp.lt.s32.totalorder %s4604_s6, %s4604_s6 }
  0x5c   :  { %3316 = vmatprep.subr.bf16.mxu1 %v5268_v5  ;;  %v5272_v8 = vld [vmem:[#allocation5 + $0xa4] ss:$16 sps:$4 sm:$0xff]   ;;  %v5276_v10 = vld [vmem:[#allocation5 + $0xa0] ss:$16 sps:$4 sm:$0xff]   ;;  %3346 = vmatprep.mubr.bf16.mxu1 %v6408_v51  ;;  %p6302_p7 = scmp.ne.s32.totalorder %s4604_s6, %s6301_s15  ;;  %p6307_p9 = scmp.lt.s32.totalorder %s6301_s15, %s6301_s15 }
  0x5d   :  { %v5274_v9 = vld [vmem:[#allocation5 + $0x2a4] ss:$16 sps:$4 sm:$0xff]   ;;  %v5277_v11 = vld [vmem:[#allocation5 + $0x2a0] ss:$16 sps:$4 sm:$0xff]  }
  0x5e   :  { %3276 = vmatpush1.bf16.msra.mxu0 %v5270_v6  ;;  %v5278_v12 = vld [vmem:[#allocation5 + $0x84] ss:$16 sps:$4 sm:$0xff]   ;;  %v5282_v14 = vld [vmem:[#allocation5 + $0x80] ss:$16 sps:$4 sm:$0xff]   ;;  %p6308_p10 = por %p6307_p9, %p6306_p8 }
  0x5f   :  { %3317 = vmatpush1.bf16.msra.mxu1 %v5271_v7  ;;  %3277 = vmatprep.subr.bf16.mxu0 %v5272_v8  ;;  %v5280_v13 = vld [vmem:[#allocation5 + $0x284] ss:$16 sps:$4 sm:$0xff]   ;;  %v5283_v15 = vld [vmem:[#allocation5 + $0x280] ss:$16 sps:$4 sm:$0xff]   ;;  %v6414_v7 = vcombine.low %v116_v48, %v116_v48 }
  0x60   :  { %3318 = vmatprep.subr.bf16.mxu1 %v5274_v9  ;;  %v5284_v16 = vld [vmem:[#allocation5 + $0x64] ss:$16 sps:$4 sm:$0xff]   ;;  %v5288_v18 = vld [vmem:[#allocation5 + $0x60] ss:$16 sps:$4 sm:$0xff]   ;;  %p6309_p11 = pnand %p6308_p10, %p6302_p7 }
  0x61   :  { %v5286_v17 = vld [vmem:[#allocation5 + $0x264] ss:$16 sps:$4 sm:$0xff]   ;;  %v5289_v19 = vld [vmem:[#allocation5 + $0x260] ss:$16 sps:$4 sm:$0xff]  }
  0x62   :  { %3278 = vmatpush1.bf16.msra.mxu0 %v5276_v10  ;;  %v5290_v20 = vld [vmem:[#allocation5 + $0x44] ss:$16 sps:$4 sm:$0xff]   ;;  %v5294_v22 = vld [vmem:[#allocation5 + $0x40] ss:$16 sps:$4 sm:$0xff]  }
  0x63   :  { %3319 = vmatpush1.bf16.msra.mxu1 %v5277_v11  ;;  %3279 = vmatprep.subr.bf16.mxu0 %v5278_v12  ;;  %v5292_v21 = vld [vmem:[#allocation5 + $0x244] ss:$16 sps:$4 sm:$0xff]   ;;  %v5295_v23 = vld [vmem:[#allocation5 + $0x240] ss:$16 sps:$4 sm:$0xff]  }
  0x64   :  { %3320 = vmatprep.subr.bf16.mxu1 %v5280_v13  ;;  %v5296_v24 = vld [vmem:[#allocation5 + $0x24] ss:$16 sps:$4 sm:$0xff]   ;;  %v5300_v26 = vld [vmem:[#allocation5 + $0x20] ss:$16 sps:$4 sm:$0xff]  }
  0x65   :  { %v5298_v25 = vld [vmem:[#allocation5 + $0x224] ss:$16 sps:$4 sm:$0xff]   ;;  %v5301_v27 = vld [vmem:[#allocation5 + $0x220] ss:$16 sps:$4 sm:$0xff]  }
  0x66   :  { %3280 = vmatpush1.bf16.msra.mxu0 %v5282_v14  ;;  %v5302_v28 = vld [vmem:[#allocation5 + $0x4] ss:$16 sps:$4 sm:$0xff]   ;;  %v5306_v30 = vld [vmem:[#allocation5] ss:$16 sps:$4 sm:$0xff]  }
  0x67   :  { %3321 = vmatpush1.bf16.msra.mxu1 %v5283_v15  ;;  %3281 = vmatprep.subr.bf16.mxu0 %v5284_v16  ;;  %v5304_v29 = vld [vmem:[#allocation5 + $0x204] ss:$16 sps:$4 sm:$0xff]   ;;  %v5307_v31 = vld [vmem:[#allocation5 + $0x200] ss:$16 sps:$4 sm:$0xff]  }
  0x68   :  { %3322 = vmatprep.subr.bf16.mxu1 %v5286_v17  ;;  %v5308_v32 = vld [vmem:[#allocation5 + $0x1e4] ss:$16 sps:$4 sm:$0xff]   ;;  %v5312_v34 = vld [vmem:[#allocation5 + $0x1e0] ss:$16 sps:$4 sm:$0xff]  }
  0x69   :  { %v5310_v33 = vld [vmem:[#allocation5 + $0x3e4] ss:$16 sps:$4 sm:$0xff]   ;;  %v5313_v35 = vld [vmem:[#allocation5 + $0x3e0] ss:$16 sps:$4 sm:$0xff]  }
  0x6a   :  { %3282 = vmatpush1.bf16.msra.mxu0 %v5288_v18  ;;  %v5314_v36 = vld [vmem:[#allocation5 + $0x1c4] ss:$16 sps:$4 sm:$0xff]   ;;  %v5318_v38 = vld [vmem:[#allocation5 + $0x1c0] ss:$16 sps:$4 sm:$0xff]  }
  0x6b   :  { %3323 = vmatpush1.bf16.msra.mxu1 %v5289_v19  ;;  %3283 = vmatprep.subr.bf16.mxu0 %v5290_v20  ;;  %v5316_v37 = vld [vmem:[#allocation5 + $0x3c4] ss:$16 sps:$4 sm:$0xff]   ;;  %v5319_v39 = vld [vmem:[#allocation5 + $0x3c0] ss:$16 sps:$4 sm:$0xff]  }
  0x6c   :  { %3324 = vmatprep.subr.bf16.mxu1 %v5292_v21  ;;  %v5320_v40 = vld [vmem:[#allocation5 + $0x1a4] ss:$16 sps:$4 sm:$0xff]   ;;  %v5324_v42 = vld [vmem:[#allocation5 + $0x1a0] ss:$16 sps:$4 sm:$0xff]  }
  0x6d   :  { %v5322_v41 = vld [vmem:[#allocation5 + $0x3a4] ss:$16 sps:$4 sm:$0xff]   ;;  %v5325_v43 = vld [vmem:[#allocation5 + $0x3a0] ss:$16 sps:$4 sm:$0xff]  }
  0x6e   :  { %3284 = vmatpush1.bf16.msra.mxu0 %v5294_v22  ;;  %v5326_v44 = vld [vmem:[#allocation5 + $0x184] ss:$16 sps:$4 sm:$0xff]   ;;  %v5330_v49 = vld [vmem:[#allocation5 + $0x180] ss:$16 sps:$4 sm:$0xff]  }
  0x6f   :  { %3325 = vmatpush1.bf16.msra.mxu1 %v5295_v23  ;;  %3285 = vmatprep.subr.bf16.mxu0 %v5296_v24  ;;  %v5328_v45 = vld [vmem:[#allocation5 + $0x384] ss:$16 sps:$4 sm:$0xff]   ;;  %v5331_v50 = vld [vmem:[#allocation5 + $0x380] ss:$16 sps:$4 sm:$0xff]  }
  0x70   :  { %3326 = vmatprep.subr.bf16.mxu1 %v5298_v25  ;;  %v115_v46 = vld [vmem:[#allocation2] sm:$0xff] }
  0x71   :  { %v6406_v47 = vcombine.high %v115_v46, %v115_v46  ;;  %v5332_v52 = vld [vmem:[#allocation5 + $0x164] ss:$16 sps:$4 sm:$0xff]   ;;  %v5336_v54 = vld [vmem:[#allocation5 + $0x160] ss:$16 sps:$4 sm:$0xff]   ;;  %v6412_v6 = vcombine.low %v115_v46, %v115_v46 }
  0x72   :  { %3286 = vmatpush1.bf16.msra.mxu0 %v5300_v26  ;;  %v5334_v53 = vld [vmem:[#allocation5 + $0x364] ss:$16 sps:$4 sm:$0xff]   ;;  %v5337_v55 = vld [vmem:[#allocation5 + $0x360] ss:$16 sps:$4 sm:$0xff]  }
  0x73   :  { %3327 = vmatpush1.bf16.msra.mxu1 %v5301_v27  ;;  %3287 = vmatprep.subr.bf16.mxu0 %v5302_v28  ;;  %v5338_v56 = vld [vmem:[#allocation5 + $0x144] ss:$16 sps:$4 sm:$0xff]   ;;  %v5342_v58 = vld [vmem:[#allocation5 + $0x140] ss:$16 sps:$4 sm:$0xff]  }
  0x74   :  { %3328 = vmatprep.subr.bf16.mxu1 %v5304_v29  ;;  %3305 = vmatprep.mubr.bf16.mxu0 %v6406_v47  ;;  %v5340_v57 = vld [vmem:[#allocation5 + $0x344] ss:$16 sps:$4 sm:$0xff]   ;;  %v5343_v59 = vld [vmem:[#allocation5 + $0x340] ss:$16 sps:$4 sm:$0xff]  }
  0x75   :  { %v5344_v60 = vld [vmem:[#allocation5 + $0x124] ss:$16 sps:$4 sm:$0xff]   ;;  %v5348_v62 = vld [vmem:[#allocation5 + $0x120] ss:$16 sps:$4 sm:$0xff]  }
  0x76   :  { %3288 = vmatpush1.bf16.msra.mxu0 %v5306_v30  ;;  %v5346_v61 = vld [vmem:[#allocation5 + $0x324] ss:$16 sps:$4 sm:$0xff]   ;;  %v5349_v63 = vld [vmem:[#allocation5 + $0x320] ss:$16 sps:$4 sm:$0xff]  }
  0x77   :  { %3329 = vmatpush1.bf16.msra.mxu1 %v5307_v31  ;;  %3289 = vmatprep.subr.bf16.mxu0 %v5308_v32  ;;  %v5350_v0 = vld [vmem:[#allocation5 + $0x104] ss:$16 sps:$4 sm:$0xff]   ;;  %v5354_v2 = vld [vmem:[#allocation5 + $0x100] ss:$16 sps:$4 sm:$0xff]  }
  0x78   :  { %3330 = vmatprep.subr.bf16.mxu1 %v5310_v33  ;;  %v5352_v1 = vld [vmem:[#allocation5 + $0x304] ss:$16 sps:$4 sm:$0xff]   ;;  %v5355_v3 = vld [vmem:[#allocation5 + $0x300] ss:$16 sps:$4 sm:$0xff]   ;;  %v6420_v33 = vld [vmem:[#allocation2 + $0x18] sm:$0xff] }
  0x79   :  { %v5362_v4 = vld [vmem:[#allocation5 + $0x4e4] ss:$16 sps:$4 sm:$0xff]   ;;  %v5360_v8 = vld [vmem:[#allocation5 + $0x4e0] ss:$16 sps:$4 sm:$0xff]  }
  0x7a   :  { %3290 = vmatpush2.bf16.msra.mxu0 %v5312_v34  ;;  %v5365_v5 = vld [vmem:[#allocation5 + $0x6e4] ss:$16 sps:$4 sm:$0xff]   ;;  %v5363_v9 = vld [vmem:[#allocation5 + $0x6e0] ss:$16 sps:$4 sm:$0xff]  }
  0x7b   :  { %3331 = vmatpush2.bf16.msra.mxu1 %v5313_v35  ;;  %3291 = vmatprep.subr.bf16.mxu0 %v5314_v36  ;;  %v5368_v10 = vld [vmem:[#allocation5 + $0x4c4] ss:$16 sps:$4 sm:$0xff]   ;;  %v5366_v12 = vld [vmem:[#allocation5 + $0x4c0] ss:$16 sps:$4 sm:$0xff]  }
  0x7c   :  { %3332 = vmatprep.subr.bf16.mxu1 %v5316_v37  ;;  %v5371_v11 = vld [vmem:[#allocation5 + $0x6c4] ss:$16 sps:$4 sm:$0xff]   ;;  %v5369_v13 = vld [vmem:[#allocation5 + $0x6c0] ss:$16 sps:$4 sm:$0xff]   ;;  %v6428_v37 = vcombine.high %v6420_v33, %v6420_v33 }
  0x7d   :  { %v5374_v14 = vld [vmem:[#allocation5 + $0x4a4] ss:$16 sps:$4 sm:$0xff]   ;;  %v5372_v16 = vld [vmem:[#allocation5 + $0x4a0] ss:$16 sps:$4 sm:$0xff]  }
  0x7e   :  { %3292 = vmatpush2.bf16.msra.mxu0 %v5318_v38  ;;  %v5377_v15 = vld [vmem:[#allocation5 + $0x6a4] ss:$16 sps:$4 sm:$0xff]   ;;  %v5375_v17 = vld [vmem:[#allocation5 + $0x6a0] ss:$16 sps:$4 sm:$0xff]  }
  0x7f   :  { %3333 = vmatpush2.bf16.msra.mxu1 %v5319_v39  ;;  %3293 = vmatprep.subr.bf16.mxu0 %v5320_v40  ;;  %v5380_v18 = vld [vmem:[#allocation5 + $0x484] ss:$16 sps:$4 sm:$0xff]   ;;  %v5378_v20 = vld [vmem:[#allocation5 + $0x480] ss:$16 sps:$4 sm:$0xff]  }
  0x80   :  { %3334 = vmatprep.subr.bf16.mxu1 %v5322_v41  ;;  %v5383_v19 = vld [vmem:[#allocation5 + $0x684] ss:$16 sps:$4 sm:$0xff]   ;;  %v5381_v21 = vld [vmem:[#allocation5 + $0x680] ss:$16 sps:$4 sm:$0xff]  }
  0x81   :  { %v5386_v22 = vld [vmem:[#allocation5 + $0x464] ss:$16 sps:$4 sm:$0xff]   ;;  %v5384_v24 = vld [vmem:[#allocation5 + $0x460] ss:$16 sps:$4 sm:$0xff]  }
  0x82   :  { %3294 = vmatpush2.bf16.msra.mxu0 %v5324_v42  ;;  %v5389_v23 = vld [vmem:[#allocation5 + $0x664] ss:$16 sps:$4 sm:$0xff]   ;;  %v5387_v25 = vld [vmem:[#allocation5 + $0x660] ss:$16 sps:$4 sm:$0xff]  }
  0x83   :  { %3335 = vmatpush2.bf16.msra.mxu1 %v5325_v43  ;;  %3295 = vmatprep.subr.bf16.mxu0 %v5326_v44  ;;  %v5392_v26 = vld [vmem:[#allocation5 + $0x444] ss:$16 sps:$4 sm:$0xff]   ;;  %v5390_v28 = vld [vmem:[#allocation5 + $0x440] ss:$16 sps:$4 sm:$0xff]  }
  0x84   :  { %3336 = vmatprep.subr.bf16.mxu1 %v5328_v45  ;;  %v5395_v27 = vld [vmem:[#allocation5 + $0x644] ss:$16 sps:$4 sm:$0xff]   ;;  %v5393_v29 = vld [vmem:[#allocation5 + $0x640] ss:$16 sps:$4 sm:$0xff]  }
  0x85   :  { %v5398_v30 = vld [vmem:[#allocation5 + $0x424] ss:$16 sps:$4 sm:$0xff]   ;;  %v5396_v34 = vld [vmem:[#allocation5 + $0x420] ss:$16 sps:$4 sm:$0xff]  }
  0x86   :  { %3296 = vmatpush2.bf16.msra.mxu0 %v5330_v49  ;;  %v5401_v31 = vld [vmem:[#allocation5 + $0x624] ss:$16 sps:$4 sm:$0xff]   ;;  %v5399_v35 = vld [vmem:[#allocation5 + $0x620] ss:$16 sps:$4 sm:$0xff]  }
  0x87   :  { %3337 = vmatpush2.bf16.msra.mxu1 %v5331_v50  ;;  %3297 = vmatprep.subr.bf16.mxu0 %v5332_v52  ;;  %v6418_v32 = vld [vmem:[#allocation2 + $0x10] sm:$0xff] }
  0x88   :  { %3338 = vmatprep.subr.bf16.mxu1 %v5334_v53  ;;  %v6424_v36 = vcombine.high %v6418_v32, %v6418_v32  ;;  %v5404_v38 = vld [vmem:[#allocation5 + $0x404] ss:$16 sps:$4 sm:$0xff]   ;;  %v5402_v40 = vld [vmem:[#allocation5 + $0x400] ss:$16 sps:$4 sm:$0xff]  }
  0x89   :  { %v5407_v39 = vld [vmem:[#allocation5 + $0x604] ss:$16 sps:$4 sm:$0xff]   ;;  %v5405_v41 = vld [vmem:[#allocation5 + $0x600] ss:$16 sps:$4 sm:$0xff]  }
  0x8a   :  { %3298 = vmatpush2.bf16.msra.mxu0 %v5336_v54  ;;  %v5410_v42 = vld [vmem:[#allocation5 + $0x5e4] ss:$16 sps:$4 sm:$0xff]   ;;  %v5408_v44 = vld [vmem:[#allocation5 + $0x5e0] ss:$16 sps:$4 sm:$0xff]  }
  0x8b   :  { %3339 = vmatpush2.bf16.msra.mxu1 %v5337_v55  ;;  %3299 = vmatprep.subr.bf16.mxu0 %v5338_v56  ;;  %v5413_v43 = vld [vmem:[#allocation5 + $0x7e4] ss:$16 sps:$4 sm:$0xff]   ;;  %v5411_v45 = vld [vmem:[#allocation5 + $0x7e0] ss:$16 sps:$4 sm:$0xff]  }
  0x8c   :  { %3340 = vmatprep.subr.bf16.mxu1 %v5340_v57  ;;  %v5416_v46 = vld [vmem:[#allocation5 + $0x5c4] ss:$16 sps:$4 sm:$0xff]   ;;  %v5414_v49 = vld [vmem:[#allocation5 + $0x5c0] ss:$16 sps:$4 sm:$0xff]  }
  0x8d   :  { %v5419_v48 = vld [vmem:[#allocation5 + $0x7c4] ss:$16 sps:$4 sm:$0xff]   ;;  %v5417_v50 = vld [vmem:[#allocation5 + $0x7c0] ss:$16 sps:$4 sm:$0xff]  }
  0x8e   :  { %3300 = vmatpush2.bf16.msra.mxu0 %v5342_v58  ;;  %v5422_v52 = vld [vmem:[#allocation5 + $0x5a4] ss:$16 sps:$4 sm:$0xff]   ;;  %v5420_v54 = vld [vmem:[#allocation5 + $0x5a0] ss:$16 sps:$4 sm:$0xff]  }
  0x8f   :  { %3341 = vmatpush2.bf16.msra.mxu1 %v5343_v59  ;;  %3301 = vmatprep.subr.bf16.mxu0 %v5344_v60  ;;  %v5425_v53 = vld [vmem:[#allocation5 + $0x7a4] ss:$16 sps:$4 sm:$0xff]   ;;  %v5423_v55 = vld [vmem:[#allocation5 + $0x7a0] ss:$16 sps:$4 sm:$0xff]  }
  0x90   :  { %3342 = vmatprep.subr.bf16.mxu1 %v5346_v61  ;;  %v5428_v56 = vld [vmem:[#allocation5 + $0x584] ss:$16 sps:$4 sm:$0xff]   ;;  %v5426_v58 = vld [vmem:[#allocation5 + $0x580] ss:$16 sps:$4 sm:$0xff]  }
  0x91   :  { %v5431_v57 = vld [vmem:[#allocation5 + $0x784] ss:$16 sps:$4 sm:$0xff]   ;;  %v5429_v59 = vld [vmem:[#allocation5 + $0x780] ss:$16 sps:$4 sm:$0xff]  }
  0x92   :  { %3302 = vmatpush2.bf16.msra.mxu0 %v5348_v62  ;;  %v5434_v60 = vld [vmem:[#allocation5 + $0x564] ss:$16 sps:$4 sm:$0xff]   ;;  %v5432_v62 = vld [vmem:[#allocation5 + $0x560] ss:$16 sps:$4 sm:$0xff]  }
  0x93   :  { %3343 = vmatpush2.bf16.msra.mxu1 %v5349_v63  ;;  %3303 = vmatprep.subr.bf16.mxu0 %v5350_v0  ;;  %v5437_v61 = vld [vmem:[#allocation5 + $0x764] ss:$16 sps:$4 sm:$0xff]   ;;  %v5435_v63 = vld [vmem:[#allocation5 + $0x760] ss:$16 sps:$4 sm:$0xff]  }
  0x94   :  { %3344 = vmatprep.subr.bf16.mxu1 %v5352_v1  ;;  %v5440_v0 = vld [vmem:[#allocation5 + $0x544] ss:$16 sps:$4 sm:$0xff]  }
  0x95   :  { %v5443_v1 = vld [vmem:[#allocation5 + $0x744] ss:$16 sps:$4 sm:$0xff]  }
  0x96   :  { %3304 = vmatpush2.bf16.msra.mxu0 %v5354_v2  ;;  %v5438_v2 = vld [vmem:[#allocation5 + $0x540] ss:$16 sps:$4 sm:$0xff]  }
  0x97   :  { %3345 = vmatpush2.bf16.msra.mxu1 %v5355_v3  ;;  %3355 = vmatprep.subr.bf16.mxu0 %v5362_v4  ;;  %v5441_v3 = vld [vmem:[#allocation5 + $0x740] ss:$16 sps:$4 sm:$0xff]   ;;  %v5446_v4 = vld [vmem:[#allocation5 + $0x524] ss:$16 sps:$4 sm:$0xff]  }
  0x98   :  { %3396 = vmatprep.subr.bf16.mxu1 %v5365_v5  ;;  %v5449_v5 = vld [vmem:[#allocation5 + $0x724] ss:$16 sps:$4 sm:$0xff]  }
  0x99   :  { %3306 = vmatmul.mubr.bf16.vlgmr.msra.gmra.mxu0 %v6412_v6 }
  0x9a   :  { %3347 = vmatmul.mubr.bf16.vlgmr.msra.gmra.mxu1 %v6414_v7  ;;  %3356 = vmatpush1.bf16.msra.mxu0 %v5360_v8  ;;  %v5444_v8 = vld [vmem:[#allocation5 + $0x520] ss:$16 sps:$4 sm:$0xff]  }
  0x9b   :  { %3397 = vmatpush1.bf16.msra.mxu1 %v5363_v9  ;;  %3357 = vmatprep.subr.bf16.mxu0 %v5368_v10  ;;  %v5447_v9 = vld [vmem:[#allocation5 + $0x720] ss:$16 sps:$4 sm:$0xff]   ;;  %v5452_v10 = vld [vmem:[#allocation5 + $0x504] ss:$16 sps:$4 sm:$0xff]  }
  0x9c   :  { %3398 = vmatprep.subr.bf16.mxu1 %v5371_v11  ;;  %3387 = vmatprep.mubr.bf16.mxu0 %v6424_v36  ;;  %v5455_v11 = vld [vmem:[#allocation5 + $0x704] ss:$16 sps:$4 sm:$0xff]  }
  0x9d   :  { %3428 = vmatprep.mubr.bf16.mxu1 %v6428_v37 }
  0x9e   :  { %3358 = vmatpush1.bf16.msra.mxu0 %v5366_v12  ;;  %v5450_v12 = vld [vmem:[#allocation5 + $0x500] ss:$16 sps:$4 sm:$0xff]  }
  0x9f   :  { %3399 = vmatpush1.bf16.msra.mxu1 %v5369_v13  ;;  %3359 = vmatprep.subr.bf16.mxu0 %v5374_v14  ;;  %v5453_v13 = vld [vmem:[#allocation5 + $0x700] ss:$16 sps:$4 sm:$0xff]   ;;  %v5462_v14 = vld [vmem:[#allocation5 + $0x8e4] ss:$16 sps:$4 sm:$0xff]  }
  0xa0   :  { %3400 = vmatprep.subr.bf16.mxu1 %v5377_v15  ;;  %v5465_v15 = vld [vmem:[#allocation5 + $0xae4] ss:$16 sps:$4 sm:$0xff]  }
  0xa2   :  { %3360 = vmatpush1.bf16.msra.mxu0 %v5372_v16  ;;  %v6434_v16 = vcombine.low %v6418_v32, %v6418_v32  ;;  %v5480_v32 = vld [vmem:[#allocation5 + $0x884] ss:$16 sps:$4 sm:$0xff]  }
  0xa3   :  { %3401 = vmatpush1.bf16.msra.mxu1 %v5375_v17  ;;  %3361 = vmatprep.subr.bf16.mxu0 %v5380_v18  ;;  %v6438_v17 = vcombine.low %v6420_v33, %v6420_v33  ;;  %v5460_v18 = vld [vmem:[#allocation5 + $0x8e0] ss:$16 sps:$4 sm:$0xff]   ;;  %v5483_v33 = vld [vmem:[#allocation5 + $0xa84] ss:$16 sps:$4 sm:$0xff]  }
  0xa4   :  { %3402 = vmatprep.subr.bf16.mxu1 %v5383_v19  ;;  %v5463_v19 = vld [vmem:[#allocation5 + $0xae0] ss:$16 sps:$4 sm:$0xff]  }
  0xa6   :  { %3362 = vmatpush1.bf16.msra.mxu0 %v5378_v20  ;;  %v5468_v20 = vld [vmem:[#allocation5 + $0x8c4] ss:$16 sps:$4 sm:$0xff]  }
  0xa7   :  { %3403 = vmatpush1.bf16.msra.mxu1 %v5381_v21  ;;  %3363 = vmatprep.subr.bf16.mxu0 %v5386_v22  ;;  %v5471_v21 = vld [vmem:[#allocation5 + $0xac4] ss:$16 sps:$4 sm:$0xff]  }
  0xa8   :  { %3404 = vmatprep.subr.bf16.mxu1 %v5389_v23  ;;  %v6440_v22 = vld [vmem:[#allocation2 + $0x20] sm:$0xff]  ;;  %v6442_v23 = vld [vmem:[#allocation2 + $0x28] sm:$0xff] }
  0xaa   :  { %3364 = vmatpush1.bf16.msra.mxu0 %v5384_v24  ;;  %v6446_v24 = vcombine.high %v6440_v22, %v6440_v22 }
  0xab   :  { %3405 = vmatpush1.bf16.msra.mxu1 %v5387_v25  ;;  %3365 = vmatprep.subr.bf16.mxu0 %v5392_v26  ;;  %v6450_v25 = vcombine.high %v6442_v23, %v6442_v23  ;;  %v5466_v26 = vld [vmem:[#allocation5 + $0x8c0] ss:$16 sps:$4 sm:$0xff]  }
  0xac   :  { %3406 = vmatprep.subr.bf16.mxu1 %v5395_v27  ;;  %v5469_v27 = vld [vmem:[#allocation5 + $0xac0] ss:$16 sps:$4 sm:$0xff]  }
  0xae   :  { %3366 = vmatpush1.bf16.msra.mxu0 %v5390_v28  ;;  %v5474_v28 = vld [vmem:[#allocation5 + $0x8a4] ss:$16 sps:$4 sm:$0xff]  }
  0xaf   :  { %3407 = vmatpush1.bf16.msra.mxu1 %v5393_v29  ;;  %3367 = vmatprep.subr.bf16.mxu0 %v5398_v30  ;;  %v5477_v29 = vld [vmem:[#allocation5 + $0xaa4] ss:$16 sps:$4 sm:$0xff]   ;;  %v5472_v30 = vld [vmem:[#allocation5 + $0x8a0] ss:$16 sps:$4 sm:$0xff]  }
  0xb0   :  { %3408 = vmatprep.subr.bf16.mxu1 %v5401_v31  ;;  %v5475_v31 = vld [vmem:[#allocation5 + $0xaa0] ss:$16 sps:$4 sm:$0xff]  }
  0xb2   :  { %3368 = vmatpush1.bf16.msra.mxu0 %v5396_v34  ;;  %v5478_v34 = vld [vmem:[#allocation5 + $0x880] ss:$16 sps:$4 sm:$0xff]  }
  0xb3   :  { %3409 = vmatpush1.bf16.msra.mxu1 %v5399_v35  ;;  %3369 = vmatprep.subr.bf16.mxu0 %v5404_v38  ;;  %v5481_v35 = vld [vmem:[#allocation5 + $0xa80] ss:$16 sps:$4 sm:$0xff]   ;;  %v5486_v38 = vld [vmem:[#allocation5 + $0x864] ss:$16 sps:$4 sm:$0xff]  }
  0xb4   :  { %3410 = vmatprep.subr.bf16.mxu1 %v5407_v39  ;;  %v5489_v39 = vld [vmem:[#allocation5 + $0xa64] ss:$16 sps:$4 sm:$0xff]  }
  0xb6   :  { %3370 = vmatpush1.bf16.msra.mxu0 %v5402_v40  ;;  %v5484_v40 = vld [vmem:[#allocation5 + $0x860] ss:$16 sps:$4 sm:$0xff]  }
  0xb7   :  { %3411 = vmatpush1.bf16.msra.mxu1 %v5405_v41  ;;  %3371 = vmatprep.subr.bf16.mxu0 %v5410_v42  ;;  %v5487_v41 = vld [vmem:[#allocation5 + $0xa60] ss:$16 sps:$4 sm:$0xff]   ;;  %v5492_v42 = vld [vmem:[#allocation5 + $0x844] ss:$16 sps:$4 sm:$0xff]  }
  0xb8   :  { %3412 = vmatprep.subr.bf16.mxu1 %v5413_v43  ;;  %v5495_v43 = vld [vmem:[#allocation5 + $0xa44] ss:$16 sps:$4 sm:$0xff]  }
  0xba   :  { %3372 = vmatpush2.bf16.msra.mxu0 %v5408_v44  ;;  %v5490_v44 = vld [vmem:[#allocation5 + $0x840] ss:$16 sps:$4 sm:$0xff]  }
  0xbb   :  { %3413 = vmatpush2.bf16.msra.mxu1 %v5411_v45  ;;  %3373 = vmatprep.subr.bf16.mxu0 %v5416_v46  ;;  %v5493_v45 = vld [vmem:[#allocation5 + $0xa40] ss:$16 sps:$4 sm:$0xff]   ;;  %v5498_v46 = vld [vmem:[#allocation5 + $0x824] ss:$16 sps:$4 sm:$0xff]  }
  0xbc   :  { %3414 = vmatprep.subr.bf16.mxu1 %v5419_v48  ;;  %v5501_v48 = vld [vmem:[#allocation5 + $0xa24] ss:$16 sps:$4 sm:$0xff]  }
  0xbe   :  { %3374 = vmatpush2.bf16.msra.mxu0 %v5414_v49  ;;  %v5496_v49 = vld [vmem:[#allocation5 + $0x820] ss:$16 sps:$4 sm:$0xff]  }
  0xbf   :  { %3415 = vmatpush2.bf16.msra.mxu1 %v5417_v50  ;;  %3375 = vmatprep.subr.bf16.mxu0 %v5422_v52  ;;  %v5499_v50 = vld [vmem:[#allocation5 + $0xa20] ss:$16 sps:$4 sm:$0xff]   ;;  %v5504_v52 = vld [vmem:[#allocation5 + $0x804] ss:$16 sps:$4 sm:$0xff]  }
  0xc0   :  { %3416 = vmatprep.subr.bf16.mxu1 %v5425_v53  ;;  %v5507_v53 = vld [vmem:[#allocation5 + $0xa04] ss:$16 sps:$4 sm:$0xff]  }
  0xc2   :  { %3376 = vmatpush2.bf16.msra.mxu0 %v5420_v54  ;;  %v5502_v54 = vld [vmem:[#allocation5 + $0x800] ss:$16 sps:$4 sm:$0xff]  }
  0xc3   :  { %3417 = vmatpush2.bf16.msra.mxu1 %v5423_v55  ;;  %3377 = vmatprep.subr.bf16.mxu0 %v5428_v56  ;;  %v5505_v55 = vld [vmem:[#allocation5 + $0xa00] ss:$16 sps:$4 sm:$0xff]   ;;  %v5510_v56 = vld [vmem:[#allocation5 + $0x9e4] ss:$16 sps:$4 sm:$0xff]  }
  0xc4   :  { %3418 = vmatprep.subr.bf16.mxu1 %v5431_v57  ;;  %v5513_v57 = vld [vmem:[#allocation5 + $0xbe4] ss:$16 sps:$4 sm:$0xff]  }
  0xc6   :  { %3378 = vmatpush2.bf16.msra.mxu0 %v5426_v58  ;;  %v5508_v58 = vld [vmem:[#allocation5 + $0x9e0] ss:$16 sps:$4 sm:$0xff]  }
  0xc7   :  { %3419 = vmatpush2.bf16.msra.mxu1 %v5429_v59  ;;  %3379 = vmatprep.subr.bf16.mxu0 %v5434_v60  ;;  %v5511_v59 = vld [vmem:[#allocation5 + $0xbe0] ss:$16 sps:$4 sm:$0xff]   ;;  %v5516_v60 = vld [vmem:[#allocation5 + $0x9c4] ss:$16 sps:$4 sm:$0xff]  }
  0xc8   :  { %3420 = vmatprep.subr.bf16.mxu1 %v5437_v61  ;;  %v5519_v61 = vld [vmem:[#allocation5 + $0xbc4] ss:$16 sps:$4 sm:$0xff]  }
  0xca   :  { %3380 = vmatpush2.bf16.msra.mxu0 %v5432_v62  ;;  %v5514_v62 = vld [vmem:[#allocation5 + $0x9c0] ss:$16 sps:$4 sm:$0xff]  }
  0xcb   :  { %3421 = vmatpush2.bf16.msra.mxu1 %v5435_v63  ;;  %3381 = vmatprep.subr.bf16.mxu0 %v5440_v0  ;;  %v5517_v63 = vld [vmem:[#allocation5 + $0xbc0] ss:$16 sps:$4 sm:$0xff]   ;;  %v5522_v0 = vld [vmem:[#allocation5 + $0x9a4] ss:$16 sps:$4 sm:$0xff]  }
  0xcc   :  { %3422 = vmatprep.subr.bf16.mxu1 %v5443_v1  ;;  %v5525_v1 = vld [vmem:[#allocation5 + $0xba4] ss:$16 sps:$4 sm:$0xff]  }
  0xce   :  { %3382 = vmatpush2.bf16.msra.mxu0 %v5438_v2  ;;  %v5520_v2 = vld [vmem:[#allocation5 + $0x9a0] ss:$16 sps:$4 sm:$0xff]  }
  0xcf   :  { %3423 = vmatpush2.bf16.msra.mxu1 %v5441_v3  ;;  %3383 = vmatprep.subr.bf16.mxu0 %v5446_v4  ;;  %v5523_v3 = vld [vmem:[#allocation5 + $0xba0] ss:$16 sps:$4 sm:$0xff]   ;;  %v5528_v4 = vld [vmem:[#allocation5 + $0x984] ss:$16 sps:$4 sm:$0xff]  }
  0xd0   :  { %3424 = vmatprep.subr.bf16.mxu1 %v5449_v5  ;;  %v5531_v5 = vld [vmem:[#allocation5 + $0xb84] ss:$16 sps:$4 sm:$0xff]  }
  0xd2   :  { %3384 = vmatpush2.bf16.msra.mxu0 %v5444_v8  ;;  %v5526_v8 = vld [vmem:[#allocation5 + $0x980] ss:$16 sps:$4 sm:$0xff]  }
  0xd3   :  { %3425 = vmatpush2.bf16.msra.mxu1 %v5447_v9  ;;  %3385 = vmatprep.subr.bf16.mxu0 %v5452_v10  ;;  %v5529_v9 = vld [vmem:[#allocation5 + $0xb80] ss:$16 sps:$4 sm:$0xff]   ;;  %v5534_v10 = vld [vmem:[#allocation5 + $0x964] ss:$16 sps:$4 sm:$0xff]  }
  0xd4   :  { %3426 = vmatprep.subr.bf16.mxu1 %v5455_v11  ;;  %v5537_v11 = vld [vmem:[#allocation5 + $0xb64] ss:$16 sps:$4 sm:$0xff]  }
  0xd6   :  { %3386 = vmatpush2.bf16.msra.mxu0 %v5450_v12  ;;  %v5532_v12 = vld [vmem:[#allocation5 + $0x960] ss:$16 sps:$4 sm:$0xff]  }
  0xd7   :  { %3427 = vmatpush2.bf16.msra.mxu1 %v5453_v13  ;;  %3437 = vmatprep.subr.bf16.mxu0 %v5462_v14  ;;  %v5535_v13 = vld [vmem:[#allocation5 + $0xb60] ss:$16 sps:$4 sm:$0xff]   ;;  %v5540_v14 = vld [vmem:[#allocation5 + $0x944] ss:$16 sps:$4 sm:$0xff]  }
  0xd8   :  { %3478 = vmatprep.subr.bf16.mxu1 %v5465_v15  ;;  %v5543_v15 = vld [vmem:[#allocation5 + $0xb44] ss:$16 sps:$4 sm:$0xff]  }
  0xd9   :  { %3388 = vmatmul.mubr.bf16.vlgmr.msra.gmra.mxu0 %v6434_v16 }
  0xda   :  { %3429 = vmatmul.mubr.bf16.vlgmr.msra.gmra.mxu1 %v6438_v17  ;;  %3438 = vmatpush1.bf16.msra.mxu0 %v5460_v18  ;;  %v5538_v18 = vld [vmem:[#allocation5 + $0x940] ss:$16 sps:$4 sm:$0xff]  }
  0xdb   :  { %3479 = vmatpush1.bf16.msra.mxu1 %v5463_v19  ;;  %3439 = vmatprep.subr.bf16.mxu0 %v5468_v20  ;;  %v5541_v19 = vld [vmem:[#allocation5 + $0xb40] ss:$16 sps:$4 sm:$0xff]   ;;  %v5546_v20 = vld [vmem:[#allocation5 + $0x924] ss:$16 sps:$4 sm:$0xff]  }
  0xdc   :  { %3480 = vmatprep.subr.bf16.mxu1 %v5471_v21  ;;  %3469 = vmatprep.mubr.bf16.mxu0 %v6446_v24  ;;  %v5549_v21 = vld [vmem:[#allocation5 + $0xb24] ss:$16 sps:$4 sm:$0xff]  }
  0xdd   :  { %3510 = vmatprep.mubr.bf16.mxu1 %v6450_v25 }
  0xde   :  { %3440 = vmatpush1.bf16.msra.mxu0 %v5466_v26  ;;  %v5544_v26 = vld [vmem:[#allocation5 + $0x920] ss:$16 sps:$4 sm:$0xff]  }
  0xdf   :  { %3481 = vmatpush1.bf16.msra.mxu1 %v5469_v27  ;;  %3441 = vmatprep.subr.bf16.mxu0 %v5474_v28  ;;  %v5547_v27 = vld [vmem:[#allocation5 + $0xb20] ss:$16 sps:$4 sm:$0xff]   ;;  %v5552_v28 = vld [vmem:[#allocation5 + $0x904] ss:$16 sps:$4 sm:$0xff]  }
  0xe0   :  { %3482 = vmatprep.subr.bf16.mxu1 %v5477_v29  ;;  %v5555_v29 = vld [vmem:[#allocation5 + $0xb04] ss:$16 sps:$4 sm:$0xff]  }
  0xe2   :  { %3442 = vmatpush1.bf16.msra.mxu0 %v5472_v30  ;;  %v5550_v30 = vld [vmem:[#allocation5 + $0x900] ss:$16 sps:$4 sm:$0xff]  }
  0xe3   :  { %3483 = vmatpush1.bf16.msra.mxu1 %v5475_v31  ;;  %3443 = vmatprep.subr.bf16.mxu0 %v5480_v32  ;;  %v5553_v31 = vld [vmem:[#allocation5 + $0xb00] ss:$16 sps:$4 sm:$0xff]   ;;  %v5562_v32 = vld [vmem:[#allocation5 + $0xce4] ss:$16 sps:$4 sm:$0xff]  }
  0xe4   :  { %3484 = vmatprep.subr.bf16.mxu1 %v5483_v33  ;;  %v5565_v33 = vld [vmem:[#allocation5 + $0xee4] ss:$16 sps:$4 sm:$0xff]  }
  0xe6   :  { %3444 = vmatpush1.bf16.msra.mxu0 %v5478_v34  ;;  %v5560_v34 = vld [vmem:[#allocation5 + $0xce0] ss:$16 sps:$4 sm:$0xff]  }
  0xe7   :  { %3485 = vmatpush1.bf16.msra.mxu1 %v5481_v35  ;;  %3445 = vmatprep.subr.bf16.mxu0 %v5486_v38  ;;  %v6456_v35 = vld [vmem:[#allocation2 + $0x30] sm:$0xff]  ;;  %v6460_v38 = vcombine.low %v6440_v22, %v6440_v22 }
  0xe8   :  { %3486 = vmatprep.subr.bf16.mxu1 %v5489_v39  ;;  %v6464_v39 = vcombine.low %v6442_v23, %v6442_v23  ;;  %v5566_v23 = vld [vmem:[#allocation5 + $0xcc0] ss:$16 sps:$4 sm:$0xff]  }
  0xea   :  { %3446 = vmatpush1.bf16.msra.mxu0 %v5484_v40  ;;  %v6466_v40 = vld [vmem:[#allocation2 + $0x38] sm:$0xff] }
  0xeb   :  { %3487 = vmatpush1.bf16.msra.mxu1 %v5487_v41  ;;  %3447 = vmatprep.subr.bf16.mxu0 %v5492_v42  ;;  %v5563_v41 = vld [vmem:[#allocation5 + $0xee0] ss:$16 sps:$4 sm:$0xff]   ;;  %v5568_v42 = vld [vmem:[#allocation5 + $0xcc4] ss:$16 sps:$4 sm:$0xff]   ;;  %v6474_v22 = vcombine.high %v6466_v40, %v6466_v40 }
  0xec   :  { %3488 = vmatprep.subr.bf16.mxu1 %v5495_v43  ;;  %v5571_v43 = vld [vmem:[#allocation5 + $0xec4] ss:$16 sps:$4 sm:$0xff]  }
  0xee   :  { %3448 = vmatpush1.bf16.msra.mxu0 %v5490_v44  ;;  %v6470_v44 = vcombine.high %v6456_v35, %v6456_v35 }
  0xef   :  { %3489 = vmatpush1.bf16.msra.mxu1 %v5493_v45  ;;  %3449 = vmatprep.subr.bf16.mxu0 %v5498_v46  ;;  %v5569_v45 = vld [vmem:[#allocation5 + $0xec0] ss:$16 sps:$4 sm:$0xff]   ;;  %v5574_v46 = vld [vmem:[#allocation5 + $0xca4] ss:$16 sps:$4 sm:$0xff]  }
  0xf0   :  { %3490 = vmatprep.subr.bf16.mxu1 %v5501_v48  ;;  %v5577_v48 = vld [vmem:[#allocation5 + $0xea4] ss:$16 sps:$4 sm:$0xff]  }
  0xf2   :  { %3450 = vmatpush1.bf16.msra.mxu0 %v5496_v49  ;;  %v5572_v49 = vld [vmem:[#allocation5 + $0xca0] ss:$16 sps:$4 sm:$0xff]  }
  0xf3   :  { %3491 = vmatpush1.bf16.msra.mxu1 %v5499_v50  ;;  %3451 = vmatprep.subr.bf16.mxu0 %v5504_v52  ;;  %v5575_v50 = vld [vmem:[#allocation5 + $0xea0] ss:$16 sps:$4 sm:$0xff]   ;;  %v5580_v52 = vld [vmem:[#allocation5 + $0xc84] ss:$16 sps:$4 sm:$0xff]  }
  0xf4   :  { %3492 = vmatprep.subr.bf16.mxu1 %v5507_v53  ;;  %v5583_v53 = vld [vmem:[#allocation5 + $0xe84] ss:$16 sps:$4 sm:$0xff]  }
  0xf6   :  { %3452 = vmatpush1.bf16.msra.mxu0 %v5502_v54  ;;  %v5578_v54 = vld [vmem:[#allocation5 + $0xc80] ss:$16 sps:$4 sm:$0xff]  }
  0xf7   :  { %3493 = vmatpush1.bf16.msra.mxu1 %v5505_v55  ;;  %3453 = vmatprep.subr.bf16.mxu0 %v5510_v56  ;;  %v5581_v55 = vld [vmem:[#allocation5 + $0xe80] ss:$16 sps:$4 sm:$0xff]   ;;  %v5586_v56 = vld [vmem:[#allocation5 + $0xc64] ss:$16 sps:$4 sm:$0xff]  }
  0xf8   :  { %3494 = vmatprep.subr.bf16.mxu1 %v5513_v57  ;;  %v5589_v57 = vld [vmem:[#allocation5 + $0xe64] ss:$16 sps:$4 sm:$0xff]  }
  0xfa   :  { %3454 = vmatpush2.bf16.msra.mxu0 %v5508_v58  ;;  %v5584_v58 = vld [vmem:[#allocation5 + $0xc60] ss:$16 sps:$4 sm:$0xff]  }
  0xfb   :  { %3495 = vmatpush2.bf16.msra.mxu1 %v5511_v59  ;;  %3455 = vmatprep.subr.bf16.mxu0 %v5516_v60  ;;  %v5587_v59 = vld [vmem:[#allocation5 + $0xe60] ss:$16 sps:$4 sm:$0xff]   ;;  %v5592_v60 = vld [vmem:[#allocation5 + $0xc44] ss:$16 sps:$4 sm:$0xff]  }
  0xfc   :  { %3496 = vmatprep.subr.bf16.mxu1 %v5519_v61  ;;  %v5595_v61 = vld [vmem:[#allocation5 + $0xe44] ss:$16 sps:$4 sm:$0xff]  }
  0xfe   :  { %3456 = vmatpush2.bf16.msra.mxu0 %v5514_v62  ;;  %v5590_v62 = vld [vmem:[#allocation5 + $0xc40] ss:$16 sps:$4 sm:$0xff]  }
  0xff   :  { %3497 = vmatpush2.bf16.msra.mxu1 %v5517_v63  ;;  %3457 = vmatprep.subr.bf16.mxu0 %v5522_v0  ;;  %v5593_v63 = vld [vmem:[#allocation5 + $0xe40] ss:$16 sps:$4 sm:$0xff]   ;;  %v5598_v0 = vld [vmem:[#allocation5 + $0xc24] ss:$16 sps:$4 sm:$0xff]  }
 0x100   :  { %3498 = vmatprep.subr.bf16.mxu1 %v5525_v1  ;;  %v5601_v1 = vld [vmem:[#allocation5 + $0xe24] ss:$16 sps:$4 sm:$0xff]  }
 0x102   :  { %3458 = vmatpush2.bf16.msra.mxu0 %v5520_v2  ;;  %v5596_v2 = vld [vmem:[#allocation5 + $0xc20] ss:$16 sps:$4 sm:$0xff]  }
 0x103   :  { %3499 = vmatpush2.bf16.msra.mxu1 %v5523_v3  ;;  %3459 = vmatprep.subr.bf16.mxu0 %v5528_v4  ;;  %v5599_v3 = vld [vmem:[#allocation5 + $0xe20] ss:$16 sps:$4 sm:$0xff]   ;;  %v5604_v4 = vld [vmem:[#allocation5 + $0xc04] ss:$16 sps:$4 sm:$0xff]  }
 0x104   :  { %3500 = vmatprep.subr.bf16.mxu1 %v5531_v5  ;;  %v5607_v5 = vld [vmem:[#allocation5 + $0xe04] ss:$16 sps:$4 sm:$0xff]  }
 0x106   :  { %3460 = vmatpush2.bf16.msra.mxu0 %v5526_v8  ;;  %v5602_v8 = vld [vmem:[#allocation5 + $0xc00] ss:$16 sps:$4 sm:$0xff]  }
 0x107   :  { %3501 = vmatpush2.bf16.msra.mxu1 %v5529_v9  ;;  %3461 = vmatprep.subr.bf16.mxu0 %v5534_v10  ;;  %v5605_v9 = vld [vmem:[#allocation5 + $0xe00] ss:$16 sps:$4 sm:$0xff]   ;;  %v5610_v10 = vld [vmem:[#allocation5 + $0xde4] ss:$16 sps:$4 sm:$0xff]  }
 0x108   :  { %3502 = vmatprep.subr.bf16.mxu1 %v5537_v11  ;;  %v5613_v11 = vld [vmem:[#allocation5 + $0xfe4] ss:$16 sps:$4 sm:$0xff]  }
 0x10a   :  { %3462 = vmatpush2.bf16.msra.mxu0 %v5532_v12  ;;  %v5608_v12 = vld [vmem:[#allocation5 + $0xde0] ss:$16 sps:$4 sm:$0xff]  }
 0x10b   :  { %3503 = vmatpush2.bf16.msra.mxu1 %v5535_v13  ;;  %3463 = vmatprep.subr.bf16.mxu0 %v5540_v14  ;;  %v5611_v13 = vld [vmem:[#allocation5 + $0xfe0] ss:$16 sps:$4 sm:$0xff]   ;;  %v5616_v14 = vld [vmem:[#allocation5 + $0xdc4] ss:$16 sps:$4 sm:$0xff]  }
 0x10c   :  { %3504 = vmatprep.subr.bf16.mxu1 %v5543_v15  ;;  %v5619_v15 = vld [vmem:[#allocation5 + $0xfc4] ss:$16 sps:$4 sm:$0xff]  }
 0x10e   :  { %3464 = vmatpush2.bf16.msra.mxu0 %v5538_v18  ;;  %v5614_v18 = vld [vmem:[#allocation5 + $0xdc0] ss:$16 sps:$4 sm:$0xff]  }
 0x10f   :  { %3505 = vmatpush2.bf16.msra.mxu1 %v5541_v19  ;;  %3465 = vmatprep.subr.bf16.mxu0 %v5546_v20  ;;  %v5617_v19 = vld [vmem:[#allocation5 + $0xfc0] ss:$16 sps:$4 sm:$0xff]   ;;  %v5622_v20 = vld [vmem:[#allocation5 + $0xda4] ss:$16 sps:$4 sm:$0xff]  }
 0x110   :  { %3506 = vmatprep.subr.bf16.mxu1 %v5549_v21  ;;  %v5625_v21 = vld [vmem:[#allocation5 + $0xfa4] ss:$16 sps:$4 sm:$0xff]  }
 0x112   :  { %3466 = vmatpush2.bf16.msra.mxu0 %v5544_v26  ;;  %v5620_v26 = vld [vmem:[#allocation5 + $0xda0] ss:$16 sps:$4 sm:$0xff]  }
 0x113   :  { %3507 = vmatpush2.bf16.msra.mxu1 %v5547_v27  ;;  %3467 = vmatprep.subr.bf16.mxu0 %v5552_v28  ;;  %v5623_v27 = vld [vmem:[#allocation5 + $0xfa0] ss:$16 sps:$4 sm:$0xff]   ;;  %v5628_v28 = vld [vmem:[#allocation5 + $0xd84] ss:$16 sps:$4 sm:$0xff]  }
 0x114   :  { %3508 = vmatprep.subr.bf16.mxu1 %v5555_v29  ;;  %v5631_v29 = vld [vmem:[#allocation5 + $0xf84] ss:$16 sps:$4 sm:$0xff]  }
 0x116   :  { %3468 = vmatpush2.bf16.msra.mxu0 %v5550_v30  ;;  %v5626_v30 = vld [vmem:[#allocation5 + $0xd80] ss:$16 sps:$4 sm:$0xff]  }
 0x117   :  { %3509 = vmatpush2.bf16.msra.mxu1 %v5553_v31  ;;  %3519 = vmatprep.subr.bf16.mxu0 %v5562_v32  ;;  %v5629_v31 = vld [vmem:[#allocation5 + $0xf80] ss:$16 sps:$4 sm:$0xff]   ;;  %v5634_v32 = vld [vmem:[#allocation5 + $0xd64] ss:$16 sps:$4 sm:$0xff]  }
 0x118   :  { %3560 = vmatprep.subr.bf16.mxu1 %v5565_v33  ;;  %v5637_v33 = vld [vmem:[#allocation5 + $0xf64] ss:$16 sps:$4 sm:$0xff]  }
 0x119   :  { %3470 = vmatmul.mubr.bf16.vlgmr.msra.gmra.mxu0 %v6460_v38 }
 0x11a   :  { %3511 = vmatmul.mubr.bf16.vlgmr.msra.gmra.mxu1 %v6464_v39  ;;  %3520 = vmatpush1.bf16.msra.mxu0 %v5560_v34  ;;  %v5632_v34 = vld [vmem:[#allocation5 + $0xd60] ss:$16 sps:$4 sm:$0xff]  }
 0x11b   :  { %3561 = vmatpush1.bf16.msra.mxu1 %v5563_v41  ;;  %3521 = vmatprep.subr.bf16.mxu0 %v5568_v42  ;;  %v5635_v41 = vld [vmem:[#allocation5 + $0xf60] ss:$16 sps:$4 sm:$0xff]   ;;  %v5640_v42 = vld [vmem:[#allocation5 + $0xd44] ss:$16 sps:$4 sm:$0xff]  }
 0x11c   :  { %3562 = vmatprep.subr.bf16.mxu1 %v5571_v43  ;;  %3551 = vmatprep.mubr.bf16.mxu0 %v6470_v44  ;;  %v5643_v43 = vld [vmem:[#allocation5 + $0xf44] ss:$16 sps:$4 sm:$0xff]  }
 0x11d   :  { %3592 = vmatprep.mubr.bf16.mxu1 %v6474_v22 }
 0x11e   :  { %3522 = vmatpush1.bf16.msra.mxu0 %v5566_v23  ;;  %v5638_v23 = vld [vmem:[#allocation5 + $0xd40] ss:$16 sps:$4 sm:$0xff]  }
 0x11f   :  { %3563 = vmatpush1.bf16.msra.mxu1 %v5569_v45  ;;  %3523 = vmatprep.subr.bf16.mxu0 %v5574_v46  ;;  %v5641_v45 = vld [vmem:[#allocation5 + $0xf40] ss:$16 sps:$4 sm:$0xff]   ;;  %v637_v46 = vlaneseq }
 0x120   :  { %3564 = vmatprep.subr.bf16.mxu1 %v5577_v48  ;;  %v5646_v48 = vld [vmem:[#allocation5 + $0xd24] ss:$16 sps:$4 sm:$0xff]  }
 0x122   :  { %3524 = vmatpush1.bf16.msra.mxu0 %v5572_v49  ;;  %v5649_v49 = vld [vmem:[#allocation5 + $0xf24] ss:$16 sps:$4 sm:$0xff]  }
 0x123   :  { %3565 = vmatpush1.bf16.msra.mxu1 %v5575_v50  ;;  %3525 = vmatprep.subr.bf16.mxu0 %v5580_v52  ;;  %v5644_v50 = vld [vmem:[#allocation5 + $0xd20] ss:$16 sps:$4 sm:$0xff]  }
 0x124   :  { %3566 = vmatprep.subr.bf16.mxu1 %v5583_v53  ;;  %v5647_v52 = vld [vmem:[#allocation5 + $0xf20] ss:$16 sps:$4 sm:$0xff]   ;;  %v6480_v53 = vshrl.u32 %v637_v46, 7  ;;  %v5693_v46 = vld [vmem:[#allocation5 + $0x248] ss:$16 sps:$4 sm:$0xff]  }
 0x126   :  { %3526 = vmatpush1.bf16.msra.mxu0 %v5578_v54  ;;  %v5652_v54 = vld [vmem:[#allocation5 + $0xd04] ss:$16 sps:$4 sm:$0xff]  }
 0x127   :  { %3567 = vmatpush1.bf16.msra.mxu1 %v5581_v55  ;;  %3527 = vmatprep.subr.bf16.mxu0 %v5586_v56  ;;  %v5655_v55 = vld [vmem:[#allocation5 + $0xf04] ss:$16 sps:$4 sm:$0xff]   ;;  %v5650_v56 = vld [vmem:[#allocation5 + $0xd00] ss:$16 sps:$4 sm:$0xff]  }
 0x128   :  { %3568 = vmatprep.subr.bf16.mxu1 %v5589_v57  ;;  %v5653_v57 = vld [vmem:[#allocation5 + $0xf00] ss:$16 sps:$4 sm:$0xff]  }
 0x12a   :  { %3528 = vmatpush1.bf16.msra.mxu0 %v5584_v58  ;;  %v635_v58 = vld [vmem:[#allocation7] sm:$0xf] }
 0x12b   :  { %3569 = vmatpush1.bf16.msra.mxu1 %v5587_v59  ;;  %3529 = vmatprep.subr.bf16.mxu0 %v5592_v60  ;;  %v639_v59 = vsub.s32 0, %v6480_v53  ;;  %v5662_v60 = vld [vmem:[#allocation5 + $0xec] ss:$16 sps:$4 sm:$0xff]  }
 0x12c   :  { %3570 = vmatprep.subr.bf16.mxu1 %v5595_v61  ;;  %v5665_v61 = vld [vmem:[#allocation5 + $0x2ec] ss:$16 sps:$4 sm:$0xff]  }
 0x12e   :  { %3530 = vmatpush1.bf16.msra.mxu0 %v5590_v62  ;;  %v643_v62 = vsub.s32 1, %v6480_v53 }
 0x12f   :  { %3571 = vmatpush1.bf16.msra.mxu1 %v5593_v63  ;;  %3531 = vmatprep.subr.bf16.mxu0 %v5598_v0  ;;  %v6486_v63 = vcombine.low %v6456_v35, %v6456_v35  ;;  %v6490_v0 = vcombine.low %v6466_v40, %v6466_v40  ;;  %v5666_v40 = vld [vmem:[#allocation5 + $0xc8] ss:$16 sps:$4 sm:$0xff]  }
 0x130   :  { %3572 = vmatprep.subr.bf16.mxu1 %v5601_v1  ;;  %v5660_v1 = vld [vmem:[#allocation5 + $0xe8] ss:$16 sps:$4 sm:$0xff]  }
 0x132   :  { %3532 = vmatpush1.bf16.msra.mxu0 %v5596_v2  ;;  %v640_v2 = vrot.slane %v635_v58, %v639_v59 }
 0x133   :  { %3573 = vmatpush1.bf16.msra.mxu1 %v5599_v3  ;;  %3533 = vmatprep.subr.bf16.mxu0 %v5604_v4  ;;  %v5663_v3 = vld [vmem:[#allocation5 + $0x2e8] ss:$16 sps:$4 sm:$0xff]   ;;  %v5668_v4 = vld [vmem:[#allocation5 + $0xcc] ss:$16 sps:$4 sm:$0xff]  }
 0x134   :  { %3574 = vmatprep.subr.bf16.mxu1 %v5607_v5  ;;  %v5671_v5 = vld [vmem:[#allocation5 + $0x2cc] ss:$16 sps:$4 sm:$0xff]  }
 0x136   :  { %3534 = vmatpush1.bf16.msra.mxu0 %v5602_v8  ;;  %v644_v8 = vrot.slane %v635_v58, %v643_v62  ;;  %v5710_v58 = vld [vmem:[#allocation5 + $0x1ec] ss:$16 sps:$4 sm:$0xff]  }
 0x137   :  { %3575 = vmatpush1.bf16.msra.mxu1 %v5605_v9  ;;  %3535 = vmatprep.subr.bf16.mxu0 %v5610_v10 }
 0x138   :  { %3576 = vmatprep.subr.bf16.mxu1 %v5613_v11  ;;  %v5669_v11 = vld [vmem:[#allocation5 + $0x2c8] ss:$16 sps:$4 sm:$0xff]  }
 0x13a   :  { %3536 = vmatpush2.bf16.msra.mxu0 %v5608_v12 }
 0x13b   :  { %3577 = vmatpush2.bf16.msra.mxu1 %v5611_v13  ;;  %3537 = vmatprep.subr.bf16.mxu0 %v5616_v14  ;;  %v5674_v14 = vld [vmem:[#allocation5 + $0xac] ss:$16 sps:$4 sm:$0xff]  }
 0x13c   :  { %3578 = vmatprep.subr.bf16.mxu1 %v5619_v15  ;;  %v5677_v15 = vld [vmem:[#allocation5 + $0x2ac] ss:$16 sps:$4 sm:$0xff]  }
 0x13e   :  { %3538 = vmatpush2.bf16.msra.mxu0 %v5614_v18 }
 0x13f   :  { %3579 = vmatpush2.bf16.msra.mxu1 %v5617_v19  ;;  %3539 = vmatprep.subr.bf16.mxu0 %v5622_v20 }
 0x140   :  { %3580 = vmatprep.subr.bf16.mxu1 %v5625_v21 }
 0x142   :  { %3540 = vmatpush2.bf16.msra.mxu0 %v5620_v26  ;;  %v5672_v26 = vld [vmem:[#allocation5 + $0xa8] ss:$16 sps:$4 sm:$0xff]  }
 0x143   :  { %3581 = vmatpush2.bf16.msra.mxu1 %v5623_v27  ;;  %3541 = vmatprep.subr.bf16.mxu0 %v5628_v28  ;;  %v5675_v28 = vld [vmem:[#allocation5 + $0x2a8] ss:$16 sps:$4 sm:$0xff]  }
 0x144   :  { %3582 = vmatprep.subr.bf16.mxu1 %v5631_v29 }
 0x146   :  { %3542 = vmatpush2.bf16.msra.mxu0 %v5626_v30 }
 0x147   :  { %3583 = vmatpush2.bf16.msra.mxu1 %v5629_v31  ;;  %3543 = vmatprep.subr.bf16.mxu0 %v5634_v32  ;;  %v5680_v31 = vld [vmem:[#allocation5 + $0x8c] ss:$16 sps:$4 sm:$0xff]  }
 0x148   :  { %3584 = vmatprep.subr.bf16.mxu1 %v5637_v33  ;;  %v5683_v32 = vld [vmem:[#allocation5 + $0x28c] ss:$16 sps:$4 sm:$0xff]   ;;  %v5678_v33 = vld [vmem:[#allocation5 + $0x88] ss:$16 sps:$4 sm:$0xff]  }
 0x14a   :  { %3544 = vmatpush2.bf16.msra.mxu0 %v5632_v34  ;;  %v5689_v34 = vld [vmem:[#allocation5 + $0x26c] ss:$16 sps:$4 sm:$0xff]  }
 0x14b   :  { %3585 = vmatpush2.bf16.msra.mxu1 %v5635_v41  ;;  %3545 = vmatprep.subr.bf16.mxu0 %v5640_v42  ;;  %v5684_v41 = vld [vmem:[#allocation5 + $0x68] ss:$16 sps:$4 sm:$0xff]  }
 0x14c   :  { %3586 = vmatprep.subr.bf16.mxu1 %v5643_v43  ;;  %v5687_v42 = vld [vmem:[#allocation5 + $0x268] ss:$16 sps:$4 sm:$0xff]   ;;  %v5692_v43 = vld [vmem:[#allocation5 + $0x4c] ss:$16 sps:$4 sm:$0xff]  }
 0x14e   :  { %3546 = vmatpush2.bf16.msra.mxu0 %v5638_v23  ;;  %v5695_v23 = vld [vmem:[#allocation5 + $0x24c] ss:$16 sps:$4 sm:$0xff]  }
 0x14f   :  { %3587 = vmatpush2.bf16.msra.mxu1 %v5641_v45  ;;  %3547 = vmatprep.subr.bf16.mxu0 %v5646_v48  ;;  %v5690_v45 = vld [vmem:[#allocation5 + $0x48] ss:$16 sps:$4 sm:$0xff]   ;;  %v5698_v48 = vld [vmem:[#allocation5 + $0x2c] ss:$16 sps:$4 sm:$0xff]  }
 0x150   :  { %3588 = vmatprep.subr.bf16.mxu1 %v5649_v49  ;;  %v5701_v49 = vld [vmem:[#allocation5 + $0x22c] ss:$16 sps:$4 sm:$0xff]  }
 0x152   :  { %3548 = vmatpush2.bf16.msra.mxu0 %v5644_v50  ;;  %v5696_v50 = vld [vmem:[#allocation5 + $0x28] ss:$16 sps:$4 sm:$0xff]  }
 0x153   :  { %3589 = vmatpush2.bf16.msra.mxu1 %v5647_v52  ;;  %3549 = vmatprep.subr.bf16.mxu0 %v5652_v54  ;;  %v5699_v52 = vld [vmem:[#allocation5 + $0x228] ss:$16 sps:$4 sm:$0xff]   ;;  %v5704_v54 = vld [vmem:[#allocation5 + $0xc] ss:$16 sps:$4 sm:$0xff]  }
 0x154   :  { %3590 = vmatprep.subr.bf16.mxu1 %v5655_v55  ;;  %v5707_v55 = vld [vmem:[#allocation5 + $0x20c] ss:$16 sps:$4 sm:$0xff]  }
 0x156   :  { %3550 = vmatpush2.bf16.msra.mxu0 %v5650_v56  ;;  %v5702_v56 = vld [vmem:[#allocation5 + $0x8] ss:$16 sps:$4 sm:$0xff]  }
 0x157   :  { %3591 = vmatpush2.bf16.msra.mxu1 %v5653_v57  ;;  %3601 = vmatprep.subr.bf16.mxu0 %v5662_v60  ;;  %v5705_v57 = vld [vmem:[#allocation5 + $0x208] ss:$16 sps:$4 sm:$0xff]   ;;  %v5713_v60 = vld [vmem:[#allocation5 + $0x3ec] ss:$16 sps:$4 sm:$0xff]  }
 0x158   :  { %3642 = vmatprep.subr.bf16.mxu1 %v5665_v61  ;;  %v5708_v61 = vld [vmem:[#allocation5 + $0x1e8] ss:$16 sps:$4 sm:$0xff]  }
 0x159   :  { %v3307_v35 = vpop.f32.mrf.mxu0  ;;  %3552 = vmatmul.mubr.bf16.vlgmr.msra.gmra.mxu0 %v6486_v63 }
 0x15a   :  { %v3348_v9 = vpop.f32.mrf.mxu1  ;;  %3593 = vmatmul.mubr.bf16.vlgmr.msra.gmra.mxu1 %v6490_v0  ;;  %v3308_v10 = vadd.f32 %v3307_v35, %v640_v2  ;;  %3602 = vmatpush1.bf16.msra.mxu0 %v5660_v1  ;;  %v5711_v1 = vld [vmem:[#allocation5 + $0x3e8] ss:$16 sps:$4 sm:$0xff]   ;;  %v5716_v2 = vld [vmem:[#allocation5 + $0x1cc] ss:$16 sps:$4 sm:$0xff]  }
 0x15b   :  { %3643 = vmatpush1.bf16.msra.mxu1 %v5663_v3  ;;  %v3309_v12 = vpop.f32.mrf.mxu0  ;;  %3603 = vmatprep.subr.bf16.mxu0 %v5668_v4  ;;  %v5719_v3 = vld [vmem:[#allocation5 + $0x3cc] ss:$16 sps:$4 sm:$0xff]   ;;  %v5714_v4 = vld [vmem:[#allocation5 + $0x1c8] ss:$16 sps:$4 sm:$0xff]  }
 0x15c   :  { %v3350_v13 = vpop.f32.mrf.mxu1  ;;  %3644 = vmatprep.subr.bf16.mxu1 %v5671_v5  ;;  %v6498_v18 = vadd.f32 %v3348_v9, %v3308_v10  ;;  %v3310_v19 = vadd.f32 %v3309_v12, %v644_v8  ;;  %3633 = vmatprep.mubr.bf16.mxu0 %v6406_v47  ;;  %v5681_v47 = vld [vmem:[#allocation5 + $0x288] ss:$16 sps:$4 sm:$0xff]   ;;  %v5722_v8 = vld [vmem:[#allocation5 + $0x1ac] ss:$16 sps:$4 sm:$0xff]  }
 0x15d   :  { %3674 = vmatprep.mubr.bf16.mxu1 %v6408_v51  ;;  %v3311_v20 = vpop.f32.mrf.mxu0  ;;  %v5686_v51 = vld [vmem:[#allocation5 + $0x6c] ss:$16 sps:$4 sm:$0xff]   ;;  %v5717_v5 = vld [vmem:[#allocation5 + $0x3c8] ss:$16 sps:$4 sm:$0xff]  }
 0x15e   :  { %v3352_v21 = vpop.f32.mrf.mxu1  ;;  %v6502_v27 = vadd.f32 %v3350_v13, %v3310_v19  ;;  %3604 = vmatpush1.bf16.msra.mxu0 %v5666_v40  ;;  %v5725_v35 = vld [vmem:[#allocation5 + $0x3ac] ss:$16 sps:$4 sm:$0xff]   ;;  %v5720_v9 = vld [vmem:[#allocation5 + $0x1a8] ss:$16 sps:$4 sm:$0xff]  }
 0x15f   :  { %3645 = vmatpush1.bf16.msra.mxu1 %v5669_v11  ;;  %v3312_v29 = vpop.f32.mrf.mxu0  ;;  %3605 = vmatprep.subr.bf16.mxu0 %v5674_v14  ;;  %v5723_v40 = vld [vmem:[#allocation5 + $0x3a8] ss:$16 sps:$4 sm:$0xff]   ;;  %v5728_v10 = vld [vmem:[#allocation5 + $0x18c] ss:$16 sps:$4 sm:$0xff]  }
 0x160   :  { %v3353_v30 = vpop.f32.mrf.mxu1  ;;  %3646 = vmatprep.subr.bf16.mxu1 %v5677_v15  ;;  %v5731_v11 = vld [vmem:[#allocation5 + $0x38c] ss:$16 sps:$4 sm:$0xff]   ;;  %v5726_v12 = vld [vmem:[#allocation5 + $0x188] ss:$16 sps:$4 sm:$0xff]  }
 0x161   :  { %v5729_v13 = vld [vmem:[#allocation5 + $0x388] ss:$16 sps:$4 sm:$0xff]   ;;  %v5734_v14 = vld [vmem:[#allocation5 + $0x16c] ss:$16 sps:$4 sm:$0xff]  }
 0x162   :  { %3606 = vmatpush1.bf16.msra.mxu0 %v5672_v26  ;;  %v5737_v15 = vld [vmem:[#allocation5 + $0x36c] ss:$16 sps:$4 sm:$0xff]   ;;  %v5732_v19 = vld [vmem:[#allocation5 + $0x168] ss:$16 sps:$4 sm:$0xff]  }
 0x163   :  { %3647 = vmatpush1.bf16.msra.mxu1 %v5675_v28  ;;  %3607 = vmatprep.subr.bf16.mxu0 %v5680_v31  ;;  %v5735_v20 = vld [vmem:[#allocation5 + $0x368] ss:$16 sps:$4 sm:$0xff]   ;;  %v5740_v21 = vld [vmem:[#allocation5 + $0x14c] ss:$16 sps:$4 sm:$0xff]  }
 0x164   :  { %3648 = vmatprep.subr.bf16.mxu1 %v5683_v32  ;;  %v5743_v26 = vld [vmem:[#allocation5 + $0x34c] ss:$16 sps:$4 sm:$0xff]   ;;  %v5738_v28 = vld [vmem:[#allocation5 + $0x148] ss:$16 sps:$4 sm:$0xff]  }
 0x165   :  { %v5741_v29 = vld [vmem:[#allocation5 + $0x348] ss:$16 sps:$4 sm:$0xff]   ;;  %v5746_v30 = vld [vmem:[#allocation5 + $0x12c] ss:$16 sps:$4 sm:$0xff]  }
 0x166   :  { %3608 = vmatpush1.bf16.msra.mxu0 %v5678_v33  ;;  %v5749_v31 = vld [vmem:[#allocation5 + $0x32c] ss:$16 sps:$4 sm:$0xff]   ;;  %v5744_v32 = vld [vmem:[#allocation5 + $0x128] ss:$16 sps:$4 sm:$0xff]  }
 0x167   :  { %3649 = vmatpush1.bf16.msra.mxu1 %v5681_v47  ;;  %3609 = vmatprep.subr.bf16.mxu0 %v5686_v51  ;;  %v5747_v33 = vld [vmem:[#allocation5 + $0x328] ss:$16 sps:$4 sm:$0xff]   ;;  %v5752_v47 = vld [vmem:[#allocation5 + $0x10c] ss:$16 sps:$4 sm:$0xff]  }
 0x168   :  { %3650 = vmatprep.subr.bf16.mxu1 %v5689_v34  ;;  %v5755_v51 = vld [vmem:[#allocation5 + $0x30c] ss:$16 sps:$4 sm:$0xff]   ;;  %v5750_v34 = vld [vmem:[#allocation5 + $0x108] ss:$16 sps:$4 sm:$0xff]  }
 0x16a   :  { %3610 = vmatpush1.bf16.msra.mxu0 %v5684_v41  ;;  %v5753_v41 = vld [vmem:[#allocation5 + $0x308] ss:$16 sps:$4 sm:$0xff]  }
 0x16b   :  { %3651 = vmatpush1.bf16.msra.mxu1 %v5687_v42  ;;  %3611 = vmatprep.subr.bf16.mxu0 %v5692_v43  ;;  %v5758_v42 = vld [vmem:[#allocation5 + $0x4ec] ss:$16 sps:$4 sm:$0xff]  }
 0x16c   :  { %3652 = vmatprep.subr.bf16.mxu1 %v5695_v23  ;;  %v5761_v43 = vld [vmem:[#allocation5 + $0x6ec] ss:$16 sps:$4 sm:$0xff]   ;;  %v5756_v23 = vld [vmem:[#allocation5 + $0x4e8] ss:$16 sps:$4 sm:$0xff]  }
 0x16e   :  { %3612 = vmatpush1.bf16.msra.mxu0 %v5690_v45  ;;  %v5759_v45 = vld [vmem:[#allocation5 + $0x6e8] ss:$16 sps:$4 sm:$0xff]  }
 0x16f   :  { %3653 = vmatpush1.bf16.msra.mxu1 %v5693_v46  ;;  %3613 = vmatprep.subr.bf16.mxu0 %v5698_v48  ;;  %v5764_v46 = vld [vmem:[#allocation5 + $0x4cc] ss:$16 sps:$4 sm:$0xff]  }
 0x170   :  { %3654 = vmatprep.subr.bf16.mxu1 %v5701_v49  ;;  %v5767_v48 = vld [vmem:[#allocation5 + $0x6cc] ss:$16 sps:$4 sm:$0xff]   ;;  %v5762_v49 = vld [vmem:[#allocation5 + $0x4c8] ss:$16 sps:$4 sm:$0xff]  }
 0x172   :  { %3614 = vmatpush1.bf16.msra.mxu0 %v5696_v50  ;;  %v5765_v50 = vld [vmem:[#allocation5 + $0x6c8] ss:$16 sps:$4 sm:$0xff]  }
 0x173   :  { %3655 = vmatpush1.bf16.msra.mxu1 %v5699_v52  ;;  %3615 = vmatprep.subr.bf16.mxu0 %v5704_v54 }
 0x174   :  { %3656 = vmatprep.subr.bf16.mxu1 %v5707_v55 }
 0x176   :  { %3616 = vmatpush1.bf16.msra.mxu0 %v5702_v56 }
 0x177   :  { %3657 = vmatpush1.bf16.msra.mxu1 %v5705_v57  ;;  %3617 = vmatprep.subr.bf16.mxu0 %v5710_v58  ;;  %v5770_v58 = vld [vmem:[#allocation5 + $0x4ac] ss:$16 sps:$4 sm:$0xff]  }
 0x178   :  { %3658 = vmatprep.subr.bf16.mxu1 %v5713_v60  ;;  %v5773_v60 = vld [vmem:[#allocation5 + $0x6ac] ss:$16 sps:$4 sm:$0xff]  }
 0x17a   :  { %3618 = vmatpush2.bf16.msra.mxu0 %v5708_v61 }
 0x17b   :  { %3659 = vmatpush2.bf16.msra.mxu1 %v5711_v1  ;;  %3619 = vmatprep.subr.bf16.mxu0 %v5716_v2  ;;  %v5768_v2 = vld [vmem:[#allocation5 + $0x4a8] ss:$16 sps:$4 sm:$0xff]  }
 0x17c   :  { %3660 = vmatprep.subr.bf16.mxu1 %v5719_v3  ;;  %v5771_v3 = vld [vmem:[#allocation5 + $0x6a8] ss:$16 sps:$4 sm:$0xff]  }
 0x17e   :  { %3620 = vmatpush2.bf16.msra.mxu0 %v5714_v4 }
 0x17f   :  { %3661 = vmatpush2.bf16.msra.mxu1 %v5717_v5  ;;  %3621 = vmatprep.subr.bf16.mxu0 %v5722_v8  ;;  %v5776_v8 = vld [vmem:[#allocation5 + $0x48c] ss:$16 sps:$4 sm:$0xff]  }
 0x180   :  { %3662 = vmatprep.subr.bf16.mxu1 %v5725_v35  ;;  %v5779_v35 = vld [vmem:[#allocation5 + $0x68c] ss:$16 sps:$4 sm:$0xff]  }
 0x182   :  { %3622 = vmatpush2.bf16.msra.mxu0 %v5720_v9  ;;  %v5777_v9 = vld [vmem:[#allocation5 + $0x688] ss:$16 sps:$4 sm:$0xff]  }
 0x183   :  { %3663 = vmatpush2.bf16.msra.mxu1 %v5723_v40  ;;  %3623 = vmatprep.subr.bf16.mxu0 %v5728_v10  ;;  %v5780_v40 = vld [vmem:[#allocation5 + $0x468] ss:$16 sps:$4 sm:$0xff]  }
 0x184   :  { %3664 = vmatprep.subr.bf16.mxu1 %v5731_v11  ;;  %v5783_v10 = vld [vmem:[#allocation5 + $0x668] ss:$16 sps:$4 sm:$0xff]   ;;  %v5788_v11 = vld [vmem:[#allocation5 + $0x44c] ss:$16 sps:$4 sm:$0xff]  }
 0x186   :  { %3624 = vmatpush2.bf16.msra.mxu0 %v5726_v12  ;;  %v5791_v12 = vld [vmem:[#allocation5 + $0x64c] ss:$16 sps:$4 sm:$0xff]  }
 0x187   :  { %3665 = vmatpush2.bf16.msra.mxu1 %v5729_v13  ;;  %3625 = vmatprep.subr.bf16.mxu0 %v5734_v14  ;;  %v5786_v13 = vld [vmem:[#allocation5 + $0x448] ss:$16 sps:$4 sm:$0xff]  }
 0x188   :  { %3666 = vmatprep.subr.bf16.mxu1 %v5737_v15  ;;  %v5789_v14 = vld [vmem:[#allocation5 + $0x648] ss:$16 sps:$4 sm:$0xff]   ;;  %v5794_v15 = vld [vmem:[#allocation5 + $0x42c] ss:$16 sps:$4 sm:$0xff]  }
 0x18a   :  { %3626 = vmatpush2.bf16.msra.mxu0 %v5732_v19  ;;  %v5797_v19 = vld [vmem:[#allocation5 + $0x62c] ss:$16 sps:$4 sm:$0xff]  }
 0x18b   :  { %3667 = vmatpush2.bf16.msra.mxu1 %v5735_v20  ;;  %3627 = vmatprep.subr.bf16.mxu0 %v5740_v21  ;;  %v5792_v20 = vld [vmem:[#allocation5 + $0x428] ss:$16 sps:$4 sm:$0xff]  }
 0x18c   :  { %3668 = vmatprep.subr.bf16.mxu1 %v5743_v26  ;;  %v5795_v21 = vld [vmem:[#allocation5 + $0x628] ss:$16 sps:$4 sm:$0xff]   ;;  %v5800_v26 = vld [vmem:[#allocation5 + $0x40c] ss:$16 sps:$4 sm:$0xff]  }
 0x18e   :  { %3628 = vmatpush2.bf16.msra.mxu0 %v5738_v28  ;;  %v5803_v28 = vld [vmem:[#allocation5 + $0x60c] ss:$16 sps:$4 sm:$0xff]  }
 0x18f   :  { %3669 = vmatpush2.bf16.msra.mxu1 %v5741_v29  ;;  %3629 = vmatprep.subr.bf16.mxu0 %v5746_v30  ;;  %v5798_v29 = vld [vmem:[#allocation5 + $0x408] ss:$16 sps:$4 sm:$0xff]  }
 0x190   :  { %3670 = vmatprep.subr.bf16.mxu1 %v5749_v31  ;;  %v5801_v30 = vld [vmem:[#allocation5 + $0x608] ss:$16 sps:$4 sm:$0xff]   ;;  %v5806_v31 = vld [vmem:[#allocation5 + $0x5ec] ss:$16 sps:$4 sm:$0xff]  }
 0x192   :  { %3630 = vmatpush2.bf16.msra.mxu0 %v5744_v32  ;;  %v5809_v32 = vld [vmem:[#allocation5 + $0x7ec] ss:$16 sps:$4 sm:$0xff]  }
 0x193   :  { %3671 = vmatpush2.bf16.msra.mxu1 %v5747_v33  ;;  %3631 = vmatprep.subr.bf16.mxu0 %v5752_v47  ;;  %v5804_v33 = vld [vmem:[#allocation5 + $0x5e8] ss:$16 sps:$4 sm:$0xff]  }
 0x194   :  { %3672 = vmatprep.subr.bf16.mxu1 %v5755_v51  ;;  %v5807_v47 = vld [vmem:[#allocation5 + $0x7e8] ss:$16 sps:$4 sm:$0xff]   ;;  %v5812_v51 = vld [vmem:[#allocation5 + $0x5cc] ss:$16 sps:$4 sm:$0xff]  }
 0x196   :  { %3632 = vmatpush2.bf16.msra.mxu0 %v5750_v34  ;;  %v5815_v34 = vld [vmem:[#allocation5 + $0x7cc] ss:$16 sps:$4 sm:$0xff]  }
 0x197   :  { %3673 = vmatpush2.bf16.msra.mxu1 %v5753_v41  ;;  %3683 = vmatprep.subr.bf16.mxu0 %v5758_v42  ;;  %v5810_v41 = vld [vmem:[#allocation5 + $0x5c8] ss:$16 sps:$4 sm:$0xff]  }
 0x198   :  { %3724 = vmatprep.subr.bf16.mxu1 %v5761_v43  ;;  %v5813_v42 = vld [vmem:[#allocation5 + $0x7c8] ss:$16 sps:$4 sm:$0xff]   ;;  %v5818_v43 = vld [vmem:[#allocation5 + $0x5ac] ss:$16 sps:$4 sm:$0xff]  }
 0x199   :  { %v3389_v52 = vpop.f32.mrf.mxu0  ;;  %3634 = vmatmul.mubr.bf16.vlgmr.msra.gmra.mxu0 %v6412_v6 }
 0x19a   :  { %v3430_v54 = vpop.f32.mrf.mxu1  ;;  %3675 = vmatmul.mubr.bf16.vlgmr.msra.gmra.mxu1 %v6414_v7  ;;  %v3390_v55 = vadd.f32 %v3389_v52, %v6498_v18  ;;  %3684 = vmatpush1.bf16.msra.mxu0 %v5756_v23  ;;  %v5821_v23 = vld [vmem:[#allocation5 + $0x7ac] ss:$16 sps:$4 sm:$0xff]   ;;  %v5825_v52 = vld [vmem:[#allocation5 + $0x788] ss:$16 sps:$4 sm:$0xff]  }
 0x19b   :  { %3725 = vmatpush1.bf16.msra.mxu1 %v5759_v45  ;;  %v3391_v56 = vpop.f32.mrf.mxu0  ;;  %3685 = vmatprep.subr.bf16.mxu0 %v5764_v46  ;;  %v5816_v45 = vld [vmem:[#allocation5 + $0x5a8] ss:$16 sps:$4 sm:$0xff]  }
 0x19c   :  { %v3432_v57 = vpop.f32.mrf.mxu1  ;;  %3726 = vmatprep.subr.bf16.mxu1 %v5767_v48  ;;  %v6507_v61 = vadd.f32 %v3430_v54, %v3390_v55  ;;  %v3392_v1 = vadd.f32 %v3391_v56, %v6502_v27  ;;  %3715 = vmatprep.mubr.bf16.mxu0 %v6424_v36  ;;  %v5774_v27 = vld [vmem:[#allocation5 + $0x488] ss:$16 sps:$4 sm:$0xff]   ;;  %v5782_v36 = vld [vmem:[#allocation5 + $0x46c] ss:$16 sps:$4 sm:$0xff]  }
 0x19d   :  { %3756 = vmatprep.mubr.bf16.mxu1 %v6428_v37  ;;  %v3393_v6 = vpop.f32.mrf.mxu0  ;;  %v5785_v37 = vld [vmem:[#allocation5 + $0x66c] ss:$16 sps:$4 sm:$0xff]   ;;  %v5819_v46 = vld [vmem:[#allocation5 + $0x7a8] ss:$16 sps:$4 sm:$0xff]  }
 0x19e   :  { %v3434_v7 = vpop.f32.mrf.mxu1  ;;  %v6512_v18 = vadd.f32 %v3432_v57, %v3392_v1  ;;  %3686 = vmatpush1.bf16.msra.mxu0 %v5762_v49  ;;  %v5824_v48 = vld [vmem:[#allocation5 + $0x58c] ss:$16 sps:$4 sm:$0xff]   ;;  %v5828_v56 = vld [vmem:[#allocation5 + $0x568] ss:$16 sps:$4 sm:$0xff]  }
 0x19f   :  { %3727 = vmatpush1.bf16.msra.mxu1 %v5765_v50  ;;  %v3394_v4 = vpop.f32.mrf.mxu0  ;;  %3687 = vmatprep.subr.bf16.mxu0 %v5770_v58  ;;  %v5827_v49 = vld [vmem:[#allocation5 + $0x78c] ss:$16 sps:$4 sm:$0xff]   ;;  %v5822_v50 = vld [vmem:[#allocation5 + $0x588] ss:$16 sps:$4 sm:$0xff]  }
 0x1a0   :  { %v3435_v5 = vpop.f32.mrf.mxu1  ;;  %3728 = vmatprep.subr.bf16.mxu1 %v5773_v60  ;;  %v5830_v54 = vld [vmem:[#allocation5 + $0x56c] ss:$16 sps:$4 sm:$0xff]   ;;  %v5831_v57 = vld [vmem:[#allocation5 + $0x768] ss:$16 sps:$4 sm:$0xff]  }
 0x1a1   :  { %v5833_v55 = vld [vmem:[#allocation5 + $0x76c] ss:$16 sps:$4 sm:$0xff]   ;;  %v5834_v1 = vld [vmem:[#allocation5 + $0x548] ss:$16 sps:$4 sm:$0xff]  }
 0x1a2   :  { %3688 = vmatpush1.bf16.msra.mxu0 %v5768_v2  ;;  %v5836_v58 = vld [vmem:[#allocation5 + $0x54c] ss:$16 sps:$4 sm:$0xff]   ;;  %v5837_v2 = vld [vmem:[#allocation5 + $0x748] ss:$16 sps:$4 sm:$0xff]  }
 0x1a3   :  { %3729 = vmatpush1.bf16.msra.mxu1 %v5771_v3  ;;  %3689 = vmatprep.subr.bf16.mxu0 %v5776_v8  ;;  %v5839_v60 = vld [vmem:[#allocation5 + $0x74c] ss:$16 sps:$4 sm:$0xff]   ;;  %v5840_v7 = vld [vmem:[#allocation5 + $0x528] ss:$16 sps:$4 sm:$0xff]  }
 0x1a4   :  { %3730 = vmatprep.subr.bf16.mxu1 %v5779_v35  ;;  %v5842_v3 = vld [vmem:[#allocation5 + $0x52c] ss:$16 sps:$4 sm:$0xff]   ;;  %v5843_v4 = vld [vmem:[#allocation5 + $0x728] ss:$16 sps:$4 sm:$0xff]  }
 0x1a5   :  { %v5845_v6 = vld [vmem:[#allocation5 + $0x72c] ss:$16 sps:$4 sm:$0xff]   ;;  %v5846_v35 = vld [vmem:[#allocation5 + $0x508] ss:$16 sps:$4 sm:$0xff]  }
 0x1a6   :  { %3690 = vmatpush1.bf16.msra.mxu0 %v5774_v27  ;;  %v5848_v5 = vld [vmem:[#allocation5 + $0x50c] ss:$16 sps:$4 sm:$0xff]   ;;  %v5849_v27 = vld [vmem:[#allocation5 + $0x708] ss:$16 sps:$4 sm:$0xff]  }
 0x1a7   :  { %3731 = vmatpush1.bf16.msra.mxu1 %v5777_v9  ;;  %3691 = vmatprep.subr.bf16.mxu0 %v5782_v36  ;;  %v5851_v8 = vld [vmem:[#allocation5 + $0x70c] ss:$16 sps:$4 sm:$0xff]  }
 0x1a8   :  { %3732 = vmatprep.subr.bf16.mxu1 %v5785_v37  ;;  %v5854_v9 = vld [vmem:[#allocation5 + $0x8ec] ss:$16 sps:$4 sm:$0xff]   ;;  %v5852_v37 = vld [vmem:[#allocation5 + $0x8e8] ss:$16 sps:$4 sm:$0xff]  }
 0x1a9   :  { %v5857_v36 = vld [vmem:[#allocation5 + $0xaec] ss:$16 sps:$4 sm:$0xff]  }
 0x1aa   :  { %3692 = vmatpush1.bf16.msra.mxu0 %v5780_v40  ;;  %v5855_v40 = vld [vmem:[#allocation5 + $0xae8] ss:$16 sps:$4 sm:$0xff]  }
 0x1ab   :  { %3733 = vmatpush1.bf16.msra.mxu1 %v5783_v10  ;;  %3693 = vmatprep.subr.bf16.mxu0 %v5788_v11  ;;  %v5860_v10 = vld [vmem:[#allocation5 + $0x8cc] ss:$16 sps:$4 sm:$0xff]  }
 0x1ac   :  { %3734 = vmatprep.subr.bf16.mxu1 %v5791_v12  ;;  %v5863_v11 = vld [vmem:[#allocation5 + $0xacc] ss:$16 sps:$4 sm:$0xff]  }
 0x1ae   :  { %3694 = vmatpush1.bf16.msra.mxu0 %v5786_v13 }
 0x1af   :  { %3735 = vmatpush1.bf16.msra.mxu1 %v5789_v14  ;;  %3695 = vmatprep.subr.bf16.mxu0 %v5794_v15  ;;  %v5858_v15 = vld [vmem:[#allocation5 + $0x8c8] ss:$16 sps:$4 sm:$0xff]  }
 0x1b0   :  { %3736 = vmatprep.subr.bf16.mxu1 %v5797_v19  ;;  %v5861_v19 = vld [vmem:[#allocation5 + $0xac8] ss:$16 sps:$4 sm:$0xff]  }
 0x1b2   :  { %3696 = vmatpush1.bf16.msra.mxu0 %v5792_v20 }
 0x1b3   :  { %3737 = vmatpush1.bf16.msra.mxu1 %v5795_v21  ;;  %3697 = vmatprep.subr.bf16.mxu0 %v5800_v26  ;;  %v5866_v26 = vld [vmem:[#allocation5 + $0x8ac] ss:$16 sps:$4 sm:$0xff]  }
 0x1b4   :  { %3738 = vmatprep.subr.bf16.mxu1 %v5803_v28  ;;  %v5869_v28 = vld [vmem:[#allocation5 + $0xaac] ss:$16 sps:$4 sm:$0xff]  }
 0x1b6   :  { %3698 = vmatpush1.bf16.msra.mxu0 %v5798_v29 }
 0x1b7   :  { %3739 = vmatpush1.bf16.msra.mxu1 %v5801_v30  ;;  %3699 = vmatprep.subr.bf16.mxu0 %v5806_v31  ;;  %v5864_v31 = vld [vmem:[#allocation5 + $0x8a8] ss:$16 sps:$4 sm:$0xff]  }
 0x1b8   :  { %3740 = vmatprep.subr.bf16.mxu1 %v5809_v32  ;;  %v5867_v32 = vld [vmem:[#allocation5 + $0xaa8] ss:$16 sps:$4 sm:$0xff]  }
 0x1ba   :  { %3700 = vmatpush2.bf16.msra.mxu0 %v5804_v33 }
 0x1bb   :  { %3741 = vmatpush2.bf16.msra.mxu1 %v5807_v47  ;;  %3701 = vmatprep.subr.bf16.mxu0 %v5812_v51  ;;  %v5872_v51 = vld [vmem:[#allocation5 + $0x88c] ss:$16 sps:$4 sm:$0xff]  }
 0x1bc   :  { %3742 = vmatprep.subr.bf16.mxu1 %v5815_v34  ;;  %v5875_v34 = vld [vmem:[#allocation5 + $0xa8c] ss:$16 sps:$4 sm:$0xff]  }
 0x1be   :  { %3702 = vmatpush2.bf16.msra.mxu0 %v5810_v41  ;;  %v5881_v41 = vld [vmem:[#allocation5 + $0xa6c] ss:$16 sps:$4 sm:$0xff]  }
 0x1bf   :  { %3743 = vmatpush2.bf16.msra.mxu1 %v5813_v42  ;;  %3703 = vmatprep.subr.bf16.mxu0 %v5818_v43  ;;  %v5876_v42 = vld [vmem:[#allocation5 + $0x868] ss:$16 sps:$4 sm:$0xff]  }
 0x1c0   :  { %3744 = vmatprep.subr.bf16.mxu1 %v5821_v23  ;;  %v5879_v43 = vld [vmem:[#allocation5 + $0xa68] ss:$16 sps:$4 sm:$0xff]   ;;  %v5884_v23 = vld [vmem:[#allocation5 + $0x84c] ss:$16 sps:$4 sm:$0xff]  }
 0x1c2   :  { %3704 = vmatpush2.bf16.msra.mxu0 %v5816_v45  ;;  %v5887_v45 = vld [vmem:[#allocation5 + $0xa4c] ss:$16 sps:$4 sm:$0xff]  }
 0x1c3   :  { %3745 = vmatpush2.bf16.msra.mxu1 %v5819_v46  ;;  %3705 = vmatprep.subr.bf16.mxu0 %v5824_v48  ;;  %v5882_v46 = vld [vmem:[#allocation5 + $0x848] ss:$16 sps:$4 sm:$0xff]  }
 0x1c4   :  { %3746 = vmatprep.subr.bf16.mxu1 %v5827_v49  ;;  %v5885_v48 = vld [vmem:[#allocation5 + $0xa48] ss:$16 sps:$4 sm:$0xff]   ;;  %v5890_v49 = vld [vmem:[#allocation5 + $0x82c] ss:$16 sps:$4 sm:$0xff]  }
 0x1c6   :  { %3706 = vmatpush2.bf16.msra.mxu0 %v5822_v50  ;;  %v5893_v50 = vld [vmem:[#allocation5 + $0xa2c] ss:$16 sps:$4 sm:$0xff]  }
 0x1c7   :  { %3747 = vmatpush2.bf16.msra.mxu1 %v5825_v52  ;;  %3707 = vmatprep.subr.bf16.mxu0 %v5830_v54  ;;  %v5888_v52 = vld [vmem:[#allocation5 + $0x828] ss:$16 sps:$4 sm:$0xff]  }
 0x1c8   :  { %3748 = vmatprep.subr.bf16.mxu1 %v5833_v55  ;;  %v5891_v54 = vld [vmem:[#allocation5 + $0xa28] ss:$16 sps:$4 sm:$0xff]   ;;  %v5896_v55 = vld [vmem:[#allocation5 + $0x80c] ss:$16 sps:$4 sm:$0xff]  }
 0x1ca   :  { %3708 = vmatpush2.bf16.msra.mxu0 %v5828_v56  ;;  %v5899_v56 = vld [vmem:[#allocation5 + $0xa0c] ss:$16 sps:$4 sm:$0xff]  }
 0x1cb   :  { %3749 = vmatpush2.bf16.msra.mxu1 %v5831_v57  ;;  %3709 = vmatprep.subr.bf16.mxu0 %v5836_v58  ;;  %v5894_v57 = vld [vmem:[#allocation5 + $0x808] ss:$16 sps:$4 sm:$0xff]  }
 0x1cc   :  { %3750 = vmatprep.subr.bf16.mxu1 %v5839_v60  ;;  %v5897_v58 = vld [vmem:[#allocation5 + $0xa08] ss:$16 sps:$4 sm:$0xff]   ;;  %v5902_v60 = vld [vmem:[#allocation5 + $0x9ec] ss:$16 sps:$4 sm:$0xff]  }
 0x1ce   :  { %3710 = vmatpush2.bf16.msra.mxu0 %v5834_v1  ;;  %v5905_v1 = vld [vmem:[#allocation5 + $0xbec] ss:$16 sps:$4 sm:$0xff]  }
 0x1cf   :  { %3751 = vmatpush2.bf16.msra.mxu1 %v5837_v2  ;;  %3711 = vmatprep.subr.bf16.mxu0 %v5842_v3  ;;  %v5900_v2 = vld [vmem:[#allocation5 + $0x9e8] ss:$16 sps:$4 sm:$0xff]  }
 0x1d0   :  { %3752 = vmatprep.subr.bf16.mxu1 %v5845_v6  ;;  %v5903_v3 = vld [vmem:[#allocation5 + $0xbe8] ss:$16 sps:$4 sm:$0xff]   ;;  %v5908_v6 = vld [vmem:[#allocation5 + $0x9cc] ss:$16 sps:$4 sm:$0xff]  }
 0x1d2   :  { %3712 = vmatpush2.bf16.msra.mxu0 %v5840_v7  ;;  %v5911_v7 = vld [vmem:[#allocation5 + $0xbcc] ss:$16 sps:$4 sm:$0xff]  }
 0x1d3   :  { %3753 = vmatpush2.bf16.msra.mxu1 %v5843_v4  ;;  %3713 = vmatprep.subr.bf16.mxu0 %v5848_v5  ;;  %v5906_v4 = vld [vmem:[#allocation5 + $0x9c8] ss:$16 sps:$4 sm:$0xff]  }
 0x1d4   :  { %3754 = vmatprep.subr.bf16.mxu1 %v5851_v8  ;;  %v5909_v5 = vld [vmem:[#allocation5 + $0xbc8] ss:$16 sps:$4 sm:$0xff]   ;;  %v5914_v8 = vld [vmem:[#allocation5 + $0x9ac] ss:$16 sps:$4 sm:$0xff]  }
 0x1d6   :  { %3714 = vmatpush2.bf16.msra.mxu0 %v5846_v35  ;;  %v5917_v35 = vld [vmem:[#allocation5 + $0xbac] ss:$16 sps:$4 sm:$0xff]  }
 0x1d7   :  { %3755 = vmatpush2.bf16.msra.mxu1 %v5849_v27  ;;  %3765 = vmatprep.subr.bf16.mxu0 %v5854_v9  ;;  %v5912_v27 = vld [vmem:[#allocation5 + $0x9a8] ss:$16 sps:$4 sm:$0xff]  }
 0x1d8   :  { %3806 = vmatprep.subr.bf16.mxu1 %v5857_v36  ;;  %v5915_v9 = vld [vmem:[#allocation5 + $0xba8] ss:$16 sps:$4 sm:$0xff]   ;;  %v5920_v36 = vld [vmem:[#allocation5 + $0x98c] ss:$16 sps:$4 sm:$0xff]  }
 0x1d9   :  { %v3471_v12 = vpop.f32.mrf.mxu0  ;;  %3716 = vmatmul.mubr.bf16.vlgmr.msra.gmra.mxu0 %v6434_v16 }
 0x1da   :  { %v3512_v13 = vpop.f32.mrf.mxu1  ;;  %3757 = vmatmul.mubr.bf16.vlgmr.msra.gmra.mxu1 %v6438_v17  ;;  %v3472_v14 = vadd.f32 %v3471_v12, %v6507_v61  ;;  %3766 = vmatpush1.bf16.msra.mxu0 %v5852_v37  ;;  %v5923_v37 = vld [vmem:[#allocation5 + $0xb8c] ss:$16 sps:$4 sm:$0xff]  }
 0x1db   :  { %3807 = vmatpush1.bf16.msra.mxu1 %v5855_v40  ;;  %v3473_v20 = vpop.f32.mrf.mxu0  ;;  %3767 = vmatprep.subr.bf16.mxu0 %v5860_v10  ;;  %v5918_v40 = vld [vmem:[#allocation5 + $0x988] ss:$16 sps:$4 sm:$0xff]   ;;  %v5929_v12 = vld [vmem:[#allocation5 + $0xb6c] ss:$16 sps:$4 sm:$0xff]  }
 0x1dc   :  { %v3514_v21 = vpop.f32.mrf.mxu1  ;;  %3808 = vmatprep.subr.bf16.mxu1 %v5863_v11  ;;  %v6517_v29 = vadd.f32 %v3512_v13, %v3472_v14  ;;  %v3474_v30 = vadd.f32 %v3473_v20, %v6512_v18  ;;  %3797 = vmatprep.mubr.bf16.mxu0 %v6446_v24  ;;  %v5870_v18 = vld [vmem:[#allocation5 + $0x888] ss:$16 sps:$4 sm:$0xff]   ;;  %v5926_v11 = vld [vmem:[#allocation5 + $0x96c] ss:$16 sps:$4 sm:$0xff]  }
 0x1dd   :  { %3838 = vmatprep.mubr.bf16.mxu1 %v6450_v25  ;;  %v3475_v16 = vpop.f32.mrf.mxu0  ;;  %v5873_v24 = vld [vmem:[#allocation5 + $0xa88] ss:$16 sps:$4 sm:$0xff]   ;;  %v5878_v25 = vld [vmem:[#allocation5 + $0x86c] ss:$16 sps:$4 sm:$0xff]  }
 0x1de   :  { %v3516_v17 = vpop.f32.mrf.mxu1  ;;  %v6522_v61 = vadd.f32 %v3514_v21, %v3474_v30  ;;  %3768 = vmatpush1.bf16.msra.mxu0 %v5858_v15  ;;  %v5921_v10 = vld [vmem:[#allocation5 + $0xb88] ss:$16 sps:$4 sm:$0xff]   ;;  %v5932_v15 = vld [vmem:[#allocation5 + $0x94c] ss:$16 sps:$4 sm:$0xff]  }
 0x1df   :  { %3809 = vmatpush1.bf16.msra.mxu1 %v5861_v19  ;;  %v3476_v33 = vpop.f32.mrf.mxu0  ;;  %3769 = vmatprep.subr.bf16.mxu0 %v5866_v26  ;;  %v5924_v13 = vld [vmem:[#allocation5 + $0x968] ss:$16 sps:$4 sm:$0xff]   ;;  %v5935_v19 = vld [vmem:[#allocation5 + $0xb4c] ss:$16 sps:$4 sm:$0xff]  }
 0x1e0   :  { %v3517_v47 = vpop.f32.mrf.mxu1  ;;  %3810 = vmatprep.subr.bf16.mxu1 %v5869_v28  ;;  %v5927_v14 = vld [vmem:[#allocation5 + $0xb68] ss:$16 sps:$4 sm:$0xff]   ;;  %v5938_v26 = vld [vmem:[#allocation5 + $0x92c] ss:$16 sps:$4 sm:$0xff]  }
 0x1e1   :  { %v5930_v20 = vld [vmem:[#allocation5 + $0x948] ss:$16 sps:$4 sm:$0xff]   ;;  %v5941_v28 = vld [vmem:[#allocation5 + $0xb2c] ss:$16 sps:$4 sm:$0xff]  }
 0x1e2   :  { %3770 = vmatpush1.bf16.msra.mxu0 %v5864_v31  ;;  %v5933_v21 = vld [vmem:[#allocation5 + $0xb48] ss:$16 sps:$4 sm:$0xff]   ;;  %v5944_v17 = vld [vmem:[#allocation5 + $0x90c] ss:$16 sps:$4 sm:$0xff]  }
 0x1e3   :  { %3811 = vmatpush1.bf16.msra.mxu1 %v5867_v32  ;;  %3771 = vmatprep.subr.bf16.mxu0 %v5872_v51  ;;  %v5936_v30 = vld [vmem:[#allocation5 + $0x928] ss:$16 sps:$4 sm:$0xff]   ;;  %v5947_v31 = vld [vmem:[#allocation5 + $0xb0c] ss:$16 sps:$4 sm:$0xff]  }
 0x1e4   :  { %3812 = vmatprep.subr.bf16.mxu1 %v5875_v34  ;;  %v5939_v16 = vld [vmem:[#allocation5 + $0xb28] ss:$16 sps:$4 sm:$0xff]   ;;  %v5950_v47 = vld [vmem:[#allocation5 + $0xcec] ss:$16 sps:$4 sm:$0xff]  }
 0x1e5   :  { %v5942_v32 = vld [vmem:[#allocation5 + $0x908] ss:$16 sps:$4 sm:$0xff]   ;;  %v5953_v51 = vld [vmem:[#allocation5 + $0xeec] ss:$16 sps:$4 sm:$0xff]  }
 0x1e6   :  { %3772 = vmatpush1.bf16.msra.mxu0 %v5870_v18  ;;  %v5945_v33 = vld [vmem:[#allocation5 + $0xb08] ss:$16 sps:$4 sm:$0xff]  }
 0x1e7   :  { %3813 = vmatpush1.bf16.msra.mxu1 %v5873_v24  ;;  %3773 = vmatprep.subr.bf16.mxu0 %v5878_v25  ;;  %v5948_v34 = vld [vmem:[#allocation5 + $0xce8] ss:$16 sps:$4 sm:$0xff]   ;;  %v5956_v24 = vld [vmem:[#allocation5 + $0xccc] ss:$16 sps:$4 sm:$0xff]  }
 0x1e8   :  { %3814 = vmatprep.subr.bf16.mxu1 %v5881_v41  ;;  %v5951_v18 = vld [vmem:[#allocation5 + $0xee8] ss:$16 sps:$4 sm:$0xff]   ;;  %v5959_v25 = vld [vmem:[#allocation5 + $0xecc] ss:$16 sps:$4 sm:$0xff]  }
 0x1ea   :  { %3774 = vmatpush1.bf16.msra.mxu0 %v5876_v42 }
 0x1eb   :  { %3815 = vmatpush1.bf16.msra.mxu1 %v5879_v43  ;;  %3775 = vmatprep.subr.bf16.mxu0 %v5884_v23  ;;  %v5954_v23 = vld [vmem:[#allocation5 + $0xcc8] ss:$16 sps:$4 sm:$0xff]  }
 0x1ec   :  { %3816 = vmatprep.subr.bf16.mxu1 %v5887_v45  ;;  %v5957_v45 = vld [vmem:[#allocation5 + $0xec8] ss:$16 sps:$4 sm:$0xff]  }
 0x1ee   :  { %3776 = vmatpush1.bf16.msra.mxu0 %v5882_v46 }
 0x1ef   :  { %3817 = vmatpush1.bf16.msra.mxu1 %v5885_v48  ;;  %3777 = vmatprep.subr.bf16.mxu0 %v5890_v49  ;;  %v5962_v49 = vld [vmem:[#allocation5 + $0xcac] ss:$16 sps:$4 sm:$0xff]  }
 0x1f0   :  { %3818 = vmatprep.subr.bf16.mxu1 %v5893_v50  ;;  %v5965_v50 = vld [vmem:[#allocation5 + $0xeac] ss:$16 sps:$4 sm:$0xff]  }
 0x1f2   :  { %3778 = vmatpush1.bf16.msra.mxu0 %v5888_v52 }
 0x1f3   :  { %3819 = vmatpush1.bf16.msra.mxu1 %v5891_v54  ;;  %3779 = vmatprep.subr.bf16.mxu0 %v5896_v55  ;;  %v5963_v54 = vld [vmem:[#allocation5 + $0xea8] ss:$16 sps:$4 sm:$0xff]  }
 0x1f4   :  { %3820 = vmatprep.subr.bf16.mxu1 %v5899_v56 }
 0x1f6   :  { %3780 = vmatpush1.bf16.msra.mxu0 %v5894_v57  ;;  %v5968_v57 = vld [vmem:[#allocation5 + $0xc8c] ss:$16 sps:$4 sm:$0xff]  }
 0x1f7   :  { %3821 = vmatpush1.bf16.msra.mxu1 %v5897_v58  ;;  %3781 = vmatprep.subr.bf16.mxu0 %v5902_v60  ;;  %v5971_v58 = vld [vmem:[#allocation5 + $0xe8c] ss:$16 sps:$4 sm:$0xff]   ;;  %v5966_v60 = vld [vmem:[#allocation5 + $0xc88] ss:$16 sps:$4 sm:$0xff]  }
 0x1f8   :  { %3822 = vmatprep.subr.bf16.mxu1 %v5905_v1  ;;  %v5969_v1 = vld [vmem:[#allocation5 + $0xe88] ss:$16 sps:$4 sm:$0xff]  }
 0x1fa   :  { %3782 = vmatpush2.bf16.msra.mxu0 %v5900_v2  ;;  %v5972_v2 = vld [vmem:[#allocation5 + $0xc68] ss:$16 sps:$4 sm:$0xff]  }
 0x1fb   :  { %3823 = vmatpush2.bf16.msra.mxu1 %v5903_v3  ;;  %3783 = vmatprep.subr.bf16.mxu0 %v5908_v6  ;;  %v5975_v3 = vld [vmem:[#allocation5 + $0xe68] ss:$16 sps:$4 sm:$0xff]   ;;  %v5980_v6 = vld [vmem:[#allocation5 + $0xc4c] ss:$16 sps:$4 sm:$0xff]  }
 0x1fc   :  { %3824 = vmatprep.subr.bf16.mxu1 %v5911_v7  ;;  %v5983_v7 = vld [vmem:[#allocation5 + $0xe4c] ss:$16 sps:$4 sm:$0xff]  }
 0x1fe   :  { %3784 = vmatpush2.bf16.msra.mxu0 %v5906_v4  ;;  %v5978_v4 = vld [vmem:[#allocation5 + $0xc48] ss:$16 sps:$4 sm:$0xff]  }
 0x1ff   :  { %3825 = vmatpush2.bf16.msra.mxu1 %v5909_v5  ;;  %3785 = vmatprep.subr.bf16.mxu0 %v5914_v8  ;;  %v5981_v5 = vld [vmem:[#allocation5 + $0xe48] ss:$16 sps:$4 sm:$0xff]   ;;  %v5986_v8 = vld [vmem:[#allocation5 + $0xc2c] ss:$16 sps:$4 sm:$0xff]  }
 0x200   :  { %3826 = vmatprep.subr.bf16.mxu1 %v5917_v35  ;;  %v5989_v35 = vld [vmem:[#allocation5 + $0xe2c] ss:$16 sps:$4 sm:$0xff]  }
 0x202   :  { %3786 = vmatpush2.bf16.msra.mxu0 %v5912_v27  ;;  %v5984_v27 = vld [vmem:[#allocation5 + $0xc28] ss:$16 sps:$4 sm:$0xff]  }
 0x203   :  { %3827 = vmatpush2.bf16.msra.mxu1 %v5915_v9  ;;  %3787 = vmatprep.subr.bf16.mxu0 %v5920_v36  ;;  %v5987_v9 = vld [vmem:[#allocation5 + $0xe28] ss:$16 sps:$4 sm:$0xff]   ;;  %v5992_v36 = vld [vmem:[#allocation5 + $0xc0c] ss:$16 sps:$4 sm:$0xff]  }
 0x204   :  { %3828 = vmatprep.subr.bf16.mxu1 %v5923_v37  ;;  %v5995_v37 = vld [vmem:[#allocation5 + $0xe0c] ss:$16 sps:$4 sm:$0xff]  }
 0x206   :  { %3788 = vmatpush2.bf16.msra.mxu0 %v5918_v40  ;;  %v5990_v40 = vld [vmem:[#allocation5 + $0xc08] ss:$16 sps:$4 sm:$0xff]  }
 0x207   :  { %3829 = vmatpush2.bf16.msra.mxu1 %v5921_v10  ;;  %3789 = vmatprep.subr.bf16.mxu0 %v5926_v11  ;;  %v5993_v10 = vld [vmem:[#allocation5 + $0xe08] ss:$16 sps:$4 sm:$0xff]   ;;  %v5998_v11 = vld [vmem:[#allocation5 + $0xdec] ss:$16 sps:$4 sm:$0xff]  }
 0x208   :  { %3830 = vmatprep.subr.bf16.mxu1 %v5929_v12  ;;  %v6001_v12 = vld [vmem:[#allocation5 + $0xfec] ss:$16 sps:$4 sm:$0xff]  }
 0x20a   :  { %3790 = vmatpush2.bf16.msra.mxu0 %v5924_v13  ;;  %v5996_v13 = vld [vmem:[#allocation5 + $0xde8] ss:$16 sps:$4 sm:$0xff]  }
 0x20b   :  { %3831 = vmatpush2.bf16.msra.mxu1 %v5927_v14  ;;  %3791 = vmatprep.subr.bf16.mxu0 %v5932_v15  ;;  %v5999_v14 = vld [vmem:[#allocation5 + $0xfe8] ss:$16 sps:$4 sm:$0xff]   ;;  %v6004_v15 = vld [vmem:[#allocation5 + $0xdcc] ss:$16 sps:$4 sm:$0xff]  }
 0x20c   :  { %3832 = vmatprep.subr.bf16.mxu1 %v5935_v19  ;;  %v6007_v19 = vld [vmem:[#allocation5 + $0xfcc] ss:$16 sps:$4 sm:$0xff]  }
 0x20e   :  { %3792 = vmatpush2.bf16.msra.mxu0 %v5930_v20  ;;  %v6002_v20 = vld [vmem:[#allocation5 + $0xdc8] ss:$16 sps:$4 sm:$0xff]  }
 0x20f   :  { %3833 = vmatpush2.bf16.msra.mxu1 %v5933_v21  ;;  %3793 = vmatprep.subr.bf16.mxu0 %v5938_v26  ;;  %v6005_v21 = vld [vmem:[#allocation5 + $0xfc8] ss:$16 sps:$4 sm:$0xff]   ;;  %v6010_v26 = vld [vmem:[#allocation5 + $0xdac] ss:$16 sps:$4 sm:$0xff]  }
 0x210   :  { %3834 = vmatprep.subr.bf16.mxu1 %v5941_v28  ;;  %v6013_v28 = vld [vmem:[#allocation5 + $0xfac] ss:$16 sps:$4 sm:$0xff]  }
 0x212   :  { %3794 = vmatpush2.bf16.msra.mxu0 %v5936_v30  ;;  %v6008_v30 = vld [vmem:[#allocation5 + $0xda8] ss:$16 sps:$4 sm:$0xff]  }
 0x213   :  { %3835 = vmatpush2.bf16.msra.mxu1 %v5939_v16  ;;  %3795 = vmatprep.subr.bf16.mxu0 %v5944_v17  ;;  %v6011_v16 = vld [vmem:[#allocation5 + $0xfa8] ss:$16 sps:$4 sm:$0xff]   ;;  %v6016_v17 = vld [vmem:[#allocation5 + $0xd8c] ss:$16 sps:$4 sm:$0xff]  }
 0x214   :  { %3836 = vmatprep.subr.bf16.mxu1 %v5947_v31  ;;  %v6019_v31 = vld [vmem:[#allocation5 + $0xf8c] ss:$16 sps:$4 sm:$0xff]  }
 0x216   :  { %3796 = vmatpush2.bf16.msra.mxu0 %v5942_v32  ;;  %v6014_v32 = vld [vmem:[#allocation5 + $0xd88] ss:$16 sps:$4 sm:$0xff]  }
 0x217   :  { %3837 = vmatpush2.bf16.msra.mxu1 %v5945_v33  ;;  %3847 = vmatprep.subr.bf16.mxu0 %v5950_v47  ;;  %v6017_v33 = vld [vmem:[#allocation5 + $0xf88] ss:$16 sps:$4 sm:$0xff]   ;;  %v6022_v47 = vld [vmem:[#allocation5 + $0xd6c] ss:$16 sps:$4 sm:$0xff]  }
 0x218   :  { %3888 = vmatprep.subr.bf16.mxu1 %v5953_v51  ;;  %v6025_v51 = vld [vmem:[#allocation5 + $0xf6c] ss:$16 sps:$4 sm:$0xff]  }
 0x219   :  { %v3553_v41 = vpop.f32.mrf.mxu0  ;;  %3798 = vmatmul.mubr.bf16.vlgmr.msra.gmra.mxu0 %v6460_v38 }
 0x21a   :  { %v3594_v42 = vpop.f32.mrf.mxu1  ;;  %3839 = vmatmul.mubr.bf16.vlgmr.msra.gmra.mxu1 %v6464_v39  ;;  %v3554_v43 = vadd.f32 %v3553_v41, %v6517_v29  ;;  %3848 = vmatpush1.bf16.msra.mxu0 %v5948_v34  ;;  %v5960_v29 = vld [vmem:[#allocation5 + $0xca8] ss:$16 sps:$4 sm:$0xff]  }
 0x21b   :  { %3889 = vmatpush1.bf16.msra.mxu1 %v5951_v18  ;;  %v6527_v46 = vpop.f32.mrf.mxu0  ;;  %3849 = vmatprep.subr.bf16.mxu0 %v5956_v24  ;;  %v6020_v34 = vld [vmem:[#allocation5 + $0xd68] ss:$16 sps:$4 sm:$0xff]   ;;  %v6028_v24 = vld [vmem:[#allocation5 + $0xd4c] ss:$16 sps:$4 sm:$0xff]  }
 0x21c   :  { %v6529_v48 = vpop.f32.mrf.mxu1  ;;  %3890 = vmatprep.subr.bf16.mxu1 %v5959_v25  ;;  %v6531_v52 = vadd.f32 %v3594_v42, %v3554_v43  ;;  %3879 = vmatprep.mubr.bf16.mxu0 %v6470_v44  ;;  %v5974_v44 = vld [vmem:[#allocation5 + $0xc6c] ss:$16 sps:$4 sm:$0xff]   ;;  %v6023_v18 = vld [vmem:[#allocation5 + $0xf68] ss:$16 sps:$4 sm:$0xff]  }
 0x21d   :  { %3920 = vmatprep.mubr.bf16.mxu1 %v6474_v22  ;;  %v3557_v38 = vpop.f32.mrf.mxu0  ;;  %v5977_v22 = vld [vmem:[#allocation5 + $0xe6c] ss:$16 sps:$4 sm:$0xff]   ;;  %v6026_v41 = vld [vmem:[#allocation5 + $0xd48] ss:$16 sps:$4 sm:$0xff]  }
 0x21e   :  { %v3598_v39 = vpop.f32.mrf.mxu1  ;;  %3850 = vmatpush1.bf16.msra.mxu0 %v5954_v23  ;;  %v6031_v25 = vld [vmem:[#allocation5 + $0xf4c] ss:$16 sps:$4 sm:$0xff]   ;;  %v6029_v42 = vld [vmem:[#allocation5 + $0xf48] ss:$16 sps:$4 sm:$0xff]  }
 0x21f   :  { %3891 = vmatpush1.bf16.msra.mxu1 %v5957_v45  ;;  %v3558_v55 = vpop.f32.mrf.mxu0  ;;  %3851 = vmatprep.subr.bf16.mxu0 %v5962_v49  ;;  %v6034_v43 = vld [vmem:[#allocation5 + $0xd2c] ss:$16 sps:$4 sm:$0xff]   ;;  %v6032_v45 = vld [vmem:[#allocation5 + $0xd28] ss:$16 sps:$4 sm:$0xff]   ;;  %v3556_v39 = vadd.f32 %v6527_v46, %v6522_v61 }
 0x220   :  { %v3599_v56 = vpop.f32.mrf.mxu1  ;;  %3892 = vmatprep.subr.bf16.mxu1 %v5965_v50  ;;  %v6037_v23 = vld [vmem:[#allocation5 + $0xf2c] ss:$16 sps:$4 sm:$0xff]   ;;  %v6035_v49 = vld [vmem:[#allocation5 + $0xf28] ss:$16 sps:$4 sm:$0xff]   ;;  %v647_v55 = vsub.s32 2, %v6480_v53 }
 0x221   :  { %v6040_v50 = vld [vmem:[#allocation5 + $0xd0c] ss:$16 sps:$4 sm:$0xff]   ;;  %v6046_v56 = vld [vmem:[#allocation8 + $0x74] ss:$8 sps:$4 sm:$0xff]   ;;  %v6049_v61 = vld [vmem:[#allocation8 + $0x64] ss:$8 sps:$4 sm:$0xff]  }
 0x222   :  { %3852 = vmatpush1.bf16.msra.mxu0 %v5960_v29  ;;  %v6043_v38 = vld [vmem:[#allocation5 + $0xf0c] ss:$16 sps:$4 sm:$0xff]   ;;  %v6038_v29 = vld [vmem:[#allocation5 + $0xd08] ss:$16 sps:$4 sm:$0xff]  }
 0x223   :  { %3893 = vmatpush1.bf16.msra.mxu1 %v5963_v54  ;;  %3853 = vmatprep.subr.bf16.mxu0 %v5968_v57  ;;  %v6041_v54 = vld [vmem:[#allocation5 + $0xf08] ss:$16 sps:$4 sm:$0xff]   ;;  %v3597_v57 = vadd.f32 %v6529_v48, %v3556_v39  ;;  %v6047_v48 = vld [vmem:[#allocation8 + $0x60] ss:$8 sps:$4 sm:$0xff]   ;;  %v6074_v39 = vld [vmem:[#allocation8 + $0xd0] ss:$8 sps:$4 sm:$0xff]  }
 0x224   :  { %3894 = vmatprep.subr.bf16.mxu1 %v5971_v58  ;;  %v651_v58 = vsub.s32 3, %v6480_v53 }
 0x225   :  { %v3930_v46 = vpack.c.bf16 %v3597_v57, %v3597_v57  ;;  %v6119_v57 = vld [vmem:[#allocation8 + $0x1e0] ss:$8 sps:$4 sm:$0xff]  }
 0x226   :  { %3854 = vmatpush1.bf16.msra.mxu0 %v5966_v60  ;;  %v6160_v60 = vld [vmem:[#allocation7] sm:$0xf] }
 0x227   :  { %3895 = vmatpush1.bf16.msra.mxu1 %v5969_v1  ;;  %3855 = vmatprep.subr.bf16.mxu0 %v5974_v44  ;;  %v648_v1 = vrot.slane %v6160_v60, %v647_v55  ;;  %v6044_v44 = vld [vmem:[#allocation8 + $0x70] ss:$8 sps:$4 sm:$0xff]   ;;  %v6121_v55 = vld [vmem:[#allocation8 + $0x1e4] ss:$8 sps:$4 sm:$0xff]  }
 0x228   :  { %3896 = vmatprep.subr.bf16.mxu1 %v5977_v22  ;;  %v652_v22 = vrot.slane %v6160_v60, %v651_v58  ;;  %v6082_v58 = vld [vmem:[#allocation8 + $0xb4] ss:$8 sps:$4 sm:$0xff]  }
 0x229   :  { %v6124_v60 = vld [vmem:[#allocation8 + $0x1d4] ss:$8 sps:$4 sm:$0xff]  }
 0x22a   :  { %3856 = vmatpush1.bf16.msra.mxu0 %v5972_v2 }
 0x22b   :  { %3897 = vmatpush1.bf16.msra.mxu1 %v5975_v3  ;;  %3857 = vmatprep.subr.bf16.mxu0 %v5980_v6 }
 0x22c   :  { %3898 = vmatprep.subr.bf16.mxu1 %v5983_v7 }
 0x22e   :  { %3858 = vmatpush1.bf16.msra.mxu0 %v5978_v4 }
 0x22f   :  { %3899 = vmatpush1.bf16.msra.mxu1 %v5981_v5  ;;  %3859 = vmatprep.subr.bf16.mxu0 %v5986_v8  ;;  %v6052_v5 = vld [vmem:[#allocation8 + $0x54] ss:$8 sps:$4 sm:$0xff]  }
 0x230   :  { %3900 = vmatprep.subr.bf16.mxu1 %v5989_v35 }
 0x232   :  { %3860 = vmatpush1.bf16.msra.mxu0 %v5984_v27 }
 0x233   :  { %3901 = vmatpush1.bf16.msra.mxu1 %v5987_v9  ;;  %3861 = vmatprep.subr.bf16.mxu0 %v5992_v36 }
 0x234   :  { %3902 = vmatprep.subr.bf16.mxu1 %v5995_v37  ;;  %v6050_v37 = vld [vmem:[#allocation8 + $0x50] ss:$8 sps:$4 sm:$0xff]  }
 0x236   :  { %3862 = vmatpush1.bf16.msra.mxu0 %v5990_v40 }
 0x237   :  { %3903 = vmatpush1.bf16.msra.mxu1 %v5993_v10  ;;  %3863 = vmatprep.subr.bf16.mxu0 %v5998_v11  ;;  %v6092_v10 = vld [vmem:[#allocation8 + $0x170] ss:$8 sps:$4 sm:$0xff]   ;;  %v6094_v11 = vld [vmem:[#allocation8 + $0x174] ss:$8 sps:$4 sm:$0xff]  }
 0x238   :  { %3904 = vmatprep.subr.bf16.mxu1 %v6001_v12  ;;  %v6097_v12 = vld [vmem:[#allocation8 + $0x164] ss:$8 sps:$4 sm:$0xff]  }
 0x23a   :  { %3864 = vmatpush2.bf16.msra.mxu0 %v5996_v13  ;;  %v6053_v13 = vld [vmem:[#allocation8 + $0x40] ss:$8 sps:$4 sm:$0xff]  }
 0x23b   :  { %3905 = vmatpush2.bf16.msra.mxu1 %v5999_v14  ;;  %3865 = vmatprep.subr.bf16.mxu0 %v6004_v15  ;;  %v6095_v14 = vld [vmem:[#allocation8 + $0x160] ss:$8 sps:$4 sm:$0xff]   ;;  %v6058_v15 = vld [vmem:[#allocation8 + $0x34] ss:$8 sps:$4 sm:$0xff]  }
 0x23c   :  { %3906 = vmatprep.subr.bf16.mxu1 %v6007_v19  ;;  %v6100_v19 = vld [vmem:[#allocation8 + $0x154] ss:$8 sps:$4 sm:$0xff]  }
 0x23e   :  { %3866 = vmatpush2.bf16.msra.mxu0 %v6002_v20  ;;  %v6056_v20 = vld [vmem:[#allocation8 + $0x30] ss:$8 sps:$4 sm:$0xff]  }
 0x23f   :  { %3907 = vmatpush2.bf16.msra.mxu1 %v6005_v21  ;;  %3867 = vmatprep.subr.bf16.mxu0 %v6010_v26  ;;  %v6098_v21 = vld [vmem:[#allocation8 + $0x150] ss:$8 sps:$4 sm:$0xff]   ;;  %v6061_v26 = vld [vmem:[#allocation8 + $0x24] ss:$8 sps:$4 sm:$0xff]  }
 0x240   :  { %3908 = vmatprep.subr.bf16.mxu1 %v6013_v28  ;;  %v6103_v28 = vld [vmem:[#allocation8 + $0x144] ss:$8 sps:$4 sm:$0xff]  }
 0x242   :  { %3868 = vmatpush2.bf16.msra.mxu0 %v6008_v30  ;;  %v6059_v30 = vld [vmem:[#allocation8 + $0x20] ss:$8 sps:$4 sm:$0xff]  }
 0x243   :  { %3909 = vmatpush2.bf16.msra.mxu1 %v6011_v16  ;;  %3869 = vmatprep.subr.bf16.mxu0 %v6016_v17  ;;  %v6101_v16 = vld [vmem:[#allocation8 + $0x140] ss:$8 sps:$4 sm:$0xff]   ;;  %v6064_v17 = vld [vmem:[#allocation8 + $0x14] ss:$8 sps:$4 sm:$0xff]  }
 0x244   :  { %3910 = vmatprep.subr.bf16.mxu1 %v6019_v31  ;;  %v6106_v31 = vld [vmem:[#allocation8 + $0x134] ss:$8 sps:$4 sm:$0xff]  }
 0x246   :  { %3870 = vmatpush2.bf16.msra.mxu0 %v6014_v32  ;;  %v6062_v32 = vld [vmem:[#allocation8 + $0x10] ss:$8 sps:$4 sm:$0xff]  }
 0x247   :  { %3911 = vmatpush2.bf16.msra.mxu1 %v6017_v33  ;;  %3871 = vmatprep.subr.bf16.mxu0 %v6022_v47  ;;  %v6104_v33 = vld [vmem:[#allocation8 + $0x130] ss:$8 sps:$4 sm:$0xff]   ;;  %v6067_v47 = vld [vmem:[#allocation8 + $0x4] ss:$8 sps:$4 sm:$0xff]  }
 0x248   :  { %3912 = vmatprep.subr.bf16.mxu1 %v6025_v51  ;;  %v6109_v51 = vld [vmem:[#allocation8 + $0x124] ss:$8 sps:$4 sm:$0xff]  }
 0x24a   :  { %3872 = vmatpush2.bf16.msra.mxu0 %v6020_v34  ;;  %v6065_v34 = vld [vmem:[#allocation8] ss:$8 sps:$4 sm:$0xff]  }
 0x24b   :  { %3913 = vmatpush2.bf16.msra.mxu1 %v6023_v18  ;;  %3873 = vmatprep.subr.bf16.mxu0 %v6028_v24  ;;  %v6107_v18 = vld [vmem:[#allocation8 + $0x120] ss:$8 sps:$4 sm:$0xff]   ;;  %v6070_v24 = vld [vmem:[#allocation8 + $0xf4] ss:$8 sps:$4 sm:$0xff]  }
 0x24c   :  { %3914 = vmatprep.subr.bf16.mxu1 %v6031_v25  ;;  %v6112_v25 = vld [vmem:[#allocation8 + $0x114] ss:$8 sps:$4 sm:$0xff]  }
 0x24e   :  { %3874 = vmatpush2.bf16.msra.mxu0 %v6026_v41  ;;  %v6068_v41 = vld [vmem:[#allocation8 + $0xf0] ss:$8 sps:$4 sm:$0xff]  }
 0x24f   :  { %3915 = vmatpush2.bf16.msra.mxu1 %v6029_v42  ;;  %3875 = vmatprep.subr.bf16.mxu0 %v6034_v43  ;;  %v6110_v42 = vld [vmem:[#allocation8 + $0x110] ss:$8 sps:$4 sm:$0xff]   ;;  %v6073_v43 = vld [vmem:[#allocation8 + $0xe4] ss:$8 sps:$4 sm:$0xff]  }
 0x250   :  { %3916 = vmatprep.subr.bf16.mxu1 %v6037_v23  ;;  %v6115_v23 = vld [vmem:[#allocation8 + $0x104] ss:$8 sps:$4 sm:$0xff]  }
 0x252   :  { %3876 = vmatpush2.bf16.msra.mxu0 %v6032_v45  ;;  %v6071_v45 = vld [vmem:[#allocation8 + $0xe0] ss:$8 sps:$4 sm:$0xff]  }
 0x253   :  { %3917 = vmatpush2.bf16.msra.mxu1 %v6035_v49  ;;  %3877 = vmatprep.subr.bf16.mxu0 %v6040_v50  ;;  %v6113_v49 = vld [vmem:[#allocation8 + $0x100] ss:$8 sps:$4 sm:$0xff]   ;;  %v6076_v50 = vld [vmem:[#allocation8 + $0xd4] ss:$8 sps:$4 sm:$0xff]  }
 0x254   :  { %3918 = vmatprep.subr.bf16.mxu1 %v6043_v38  ;;  %v6118_v38 = vld [vmem:[#allocation8 + $0x1f4] ss:$8 sps:$4 sm:$0xff]  }
 0x256   :  { %3878 = vmatpush2.bf16.msra.mxu0 %v6038_v29  ;;  %v6116_v29 = vld [vmem:[#allocation8 + $0x1f0] ss:$8 sps:$4 sm:$0xff]  }
 0x257   :  { %3919 = vmatpush2.bf16.msra.mxu1 %v6041_v54  ;;  %4329 = vmatprep.subr.bf16.mxu0 %v6046_v56  ;;  %v6079_v54 = vld [vmem:[#allocation8 + $0xc4] ss:$8 sps:$4 sm:$0xff]   ;;  %v6077_v56 = vld [vmem:[#allocation8 + $0xc0] ss:$8 sps:$4 sm:$0xff]  }
 0x258   :  { %4370 = vmatprep.subr.bf16.mxu1 %v6094_v11 }
 0x259   :  { %v3635_v2 = vpop.f32.mrf.mxu0  ;;  %3880 = vmatmul.mubr.bf16.vlgmr.msra.gmra.mxu0 %v6486_v63 }
 0x25a   :  { %v3676_v3 = vpop.f32.mrf.mxu1  ;;  %3921 = vmatmul.mubr.bf16.vlgmr.msra.gmra.mxu1 %v6490_v0  ;;  %v3636_v6 = vadd.f32 %v3635_v2, %v648_v1  ;;  %4330 = vmatpush1.bf16.msra.mxu0 %v6044_v44  ;;  %v6055_v0 = vld [vmem:[#allocation8 + $0x44] ss:$8 sps:$4 sm:$0xff]   ;;  %v6080_v1 = vld [vmem:[#allocation8 + $0xb0] ss:$8 sps:$4 sm:$0xff]   ;;  %v6125_v2 = vld [vmem:[#allocation8 + $0x1c0] ss:$8 sps:$4 sm:$0xff]  }
 0x25b   :  { %4361 = vmatprep.mubr.bf16.mxu0 %v3930_v46  ;;  %v3637_v7 = vpop.f32.mrf.mxu0  ;;  %4331 = vmatprep.subr.bf16.mxu0 %v6049_v61  ;;  %v6122_v44 = vld [vmem:[#allocation8 + $0x1d0] ss:$8 sps:$4 sm:$0xff]   ;;  %v6085_v61 = vld [vmem:[#allocation8 + $0xa4] ss:$8 sps:$4 sm:$0xff]  }
 0x25c   :  { %v3678_v4 = vpop.f32.mrf.mxu1  ;;  %v6542_v8 = vadd.f32 %v3676_v3, %v3636_v6  ;;  %v3638_v35 = vadd.f32 %v3637_v7, %v652_v22  ;;  %4371 = vmatpush1.bf16.msra.mxu1 %v6092_v10  ;;  %v6127_v46 = vld [vmem:[#allocation8 + $0x1c4] ss:$8 sps:$4 sm:$0xff]   ;;  %v6083_v22 = vld [vmem:[#allocation8 + $0xa0] ss:$8 sps:$4 sm:$0xff]   ;;  %v6088_v3 = vld [vmem:[#allocation8 + $0x94] ss:$8 sps:$4 sm:$0xff]  }
 0x25d   :  { %v3639_v27 = vpop.f32.mrf.mxu0  ;;  %4372 = vmatprep.subr.bf16.mxu1 %v6097_v12  ;;  %v6130_v6 = vld [vmem:[#allocation8 + $0x1b4] ss:$8 sps:$4 sm:$0xff]   ;;  %v6128_v7 = vld [vmem:[#allocation8 + $0x1b0] ss:$8 sps:$4 sm:$0xff]  }
 0x25e   :  { %v3680_v9 = vpop.f32.mrf.mxu1  ;;  %v6544_v36 = vadd.f32 %v3678_v4, %v3638_v35  ;;  %4332 = vmatpush1.bf16.msra.mxu0 %v6047_v48  ;;  %v6086_v48 = vld [vmem:[#allocation8 + $0x90] ss:$8 sps:$4 sm:$0xff]   ;;  %v6091_v4 = vld [vmem:[#allocation8 + $0x84] ss:$8 sps:$4 sm:$0xff]   ;;  %v6089_v35 = vld [vmem:[#allocation8 + $0x80] ss:$8 sps:$4 sm:$0xff]  }
 0x25f   :  { %v3640_v63 = vpop.f32.mrf.mxu0  ;;  %4333 = vmatprep.subr.bf16.mxu0 %v6052_v5  ;;  %v6133_v5 = vld [vmem:[#allocation8 + $0x1a4] ss:$8 sps:$4 sm:$0xff]   ;;  %v6131_v27 = vld [vmem:[#allocation8 + $0x1a0] ss:$8 sps:$4 sm:$0xff]   ;;  %v3929_v9 = vpack.c.bf16 %v6531_v52, %v6531_v52  ;;  %v6134_v10 = vld [vmem:[#allocation8 + $0x190] ss:$8 sps:$4 sm:$0xff]  }
 0x260   :  { %v3681_v40 = vpop.f32.mrf.mxu1  ;;  %4373 = vmatpush1.bf16.msra.mxu1 %v6095_v14 }
 0x261   :  { %4374 = vmatprep.subr.bf16.mxu1 %v6100_v19  ;;  %v6136_v40 = vld [vmem:[#allocation8 + $0x194] ss:$8 sps:$4 sm:$0xff]  }
 0x262   :  { %4334 = vmatpush1.bf16.msra.mxu0 %v6050_v37 }
 0x263   :  { %4335 = vmatprep.subr.bf16.mxu0 %v6055_v0 }
 0x264   :  { %4375 = vmatpush1.bf16.msra.mxu1 %v6098_v21 }
 0x265   :  { %4376 = vmatprep.subr.bf16.mxu1 %v6103_v28 }
 0x266   :  { %4336 = vmatpush1.bf16.msra.mxu0 %v6053_v13 }
 0x267   :  { %4337 = vmatprep.subr.bf16.mxu0 %v6058_v15 }
 0x268   :  { %4377 = vmatpush1.bf16.msra.mxu1 %v6101_v16 }
 0x269   :  { %4378 = vmatprep.subr.bf16.mxu1 %v6106_v31 }
 0x26a   :  { %4338 = vmatpush1.bf16.msra.mxu0 %v6056_v20  ;;  %v6139_v20 = vld [vmem:[#allocation8 + $0x184] ss:$8 sps:$4 sm:$0xff]  }
 0x26b   :  { %4339 = vmatprep.subr.bf16.mxu0 %v6061_v26  ;;  %v6137_v26 = vld [vmem:[#allocation8 + $0x180] ss:$8 sps:$4 sm:$0xff]  }
 0x26c   :  { %4379 = vmatpush1.bf16.msra.mxu1 %v6104_v33 }
 0x26d   :  { %4380 = vmatprep.subr.bf16.mxu1 %v6109_v51 }
 0x26e   :  { %4340 = vmatpush1.bf16.msra.mxu0 %v6059_v30 }
 0x26f   :  { %4341 = vmatprep.subr.bf16.mxu0 %v6064_v17 }
 0x270   :  { %4381 = vmatpush1.bf16.msra.mxu1 %v6107_v18  ;;  %v6141_v18 = vld [vmem:[#allocation11 + $0x38] sm:$0xff]  }
 0x271   :  { %4382 = vmatprep.subr.bf16.mxu1 %v6112_v25  ;;  %v6143_v25 = vld [vmem:[#allocation11 + $0x30] sm:$0xff]  }
 0x272   :  { %4342 = vmatpush1.bf16.msra.mxu0 %v6062_v32 }
 0x273   :  { %4343 = vmatprep.subr.bf16.mxu0 %v6067_v47 }
 0x274   :  { %4383 = vmatpush1.bf16.msra.mxu1 %v6110_v42  ;;  %v6145_v42 = vld [vmem:[#allocation11 + $0x28] sm:$0xff]  }
 0x275   :  { %4384 = vmatprep.subr.bf16.mxu1 %v6115_v23  ;;  %v6147_v23 = vld [vmem:[#allocation11 + $0x20] sm:$0xff]  }
 0x276   :  { %4344 = vmatpush1.bf16.msra.mxu0 %v6065_v34  ;;  %v6140_v34 = vld [vmem:[#allocation11 + $0x78] sm:$0xff]  }
 0x277   :  { %4345 = vmatprep.subr.bf16.mxu0 %v6070_v24  ;;  %v6142_v24 = vld [vmem:[#allocation11 + $0x70] sm:$0xff]  }
 0x278   :  { %4385 = vmatpush1.bf16.msra.mxu1 %v6113_v49  ;;  %v6149_v49 = vld [vmem:[#allocation11 + $0x18] sm:$0xff]  }
 0x279   :  { %4386 = vmatprep.subr.bf16.mxu1 %v6118_v38  ;;  %v6151_v38 = vld [vmem:[#allocation11 + $0x10] sm:$0xff]  }
 0x27a   :  { %4346 = vmatpush2.bf16.msra.mxu0 %v6068_v41  ;;  %v6144_v41 = vld [vmem:[#allocation11 + $0x68] sm:$0xff]  }
 0x27b   :  { %4347 = vmatprep.subr.bf16.mxu0 %v6073_v43  ;;  %v6146_v43 = vld [vmem:[#allocation11 + $0x60] sm:$0xff]  }
 0x27c   :  { %4387 = vmatpush2.bf16.msra.mxu1 %v6116_v29 }
 0x27d   :  { %4388 = vmatprep.subr.bf16.mxu1 %v6121_v55 }
 0x27e   :  { %4348 = vmatpush2.bf16.msra.mxu0 %v6071_v45  ;;  %v6148_v45 = vld [vmem:[#allocation11 + $0x58] sm:$0xff]  }
 0x27f   :  { %4349 = vmatprep.subr.bf16.mxu0 %v6076_v50  ;;  %v6150_v50 = vld [vmem:[#allocation11 + $0x50] sm:$0xff]  }
 0x280   :  { %4389 = vmatpush2.bf16.msra.mxu1 %v6119_v57 }
 0x281   :  { %4390 = vmatprep.subr.bf16.mxu1 %v6124_v60 }
 0x282   :  { %4350 = vmatpush2.bf16.msra.mxu0 %v6074_v39 }
 0x283   :  { %4351 = vmatprep.subr.bf16.mxu0 %v6079_v54 }
 0x284   :  { %4391 = vmatpush2.bf16.msra.mxu1 %v6122_v44 }
 0x285   :  { %4392 = vmatprep.subr.bf16.mxu1 %v6127_v46 }
 0x286   :  { %4352 = vmatpush2.bf16.msra.mxu0 %v6077_v56 }
 0x287   :  { %4353 = vmatprep.subr.bf16.mxu0 %v6082_v58 }
 0x288   :  { %4393 = vmatpush2.bf16.msra.mxu1 %v6125_v2 }
 0x289   :  { %4394 = vmatprep.subr.bf16.mxu1 %v6130_v6 }
 0x28a   :  { %4354 = vmatpush2.bf16.msra.mxu0 %v6080_v1 }
 0x28b   :  { %4355 = vmatprep.subr.bf16.mxu0 %v6085_v61 }
 0x28c   :  { %4395 = vmatpush2.bf16.msra.mxu1 %v6128_v7 }
 0x28d   :  { %4396 = vmatprep.subr.bf16.mxu1 %v6133_v5 }
 0x28e   :  { %4356 = vmatpush2.bf16.msra.mxu0 %v6083_v22 }
 0x28f   :  { %4357 = vmatprep.subr.bf16.mxu0 %v6088_v3 }
 0x290   :  { %4397 = vmatpush2.bf16.msra.mxu1 %v6131_v27  ;;  %v6153_v27 = vld [vmem:[#allocation11 + $0x8] sm:$0xff]  }
 0x291   :  { %4398 = vmatprep.subr.bf16.mxu1 %v6136_v40 }
 0x292   :  { %4358 = vmatpush2.bf16.msra.mxu0 %v6086_v48 }
 0x293   :  { %4359 = vmatprep.subr.bf16.mxu0 %v6091_v4 }
 0x294   :  { %4399 = vmatpush2.bf16.msra.mxu1 %v6134_v10 }
 0x295   :  { %4400 = vmatprep.subr.bf16.mxu1 %v6139_v20 }
 0x296   :  { %4360 = vmatpush2.bf16.msra.mxu0 %v6089_v35  ;;  %v6152_v35 = vld [vmem:[#allocation11 + $0x48] sm:$0xff]  }
 0x297   :  { %5224 = vmatprep.subr.bf16.mxu0 %v6140_v34 }
 0x298   :  { %4401 = vmatpush2.bf16.msra.mxu1 %v6137_v26 }
 0x299   :  { %v3717_v37 = vpop.f32.mrf.mxu0  ;;  %4362 = vmatmul.mubr.bf16.vlgmr.msra.gmra.mxu0 %v3929_v9  ;;  %v6154_v9 = vld [vmem:[#allocation11 + $0x40] sm:$0xff]  }
 0x29a   :  { %v3758_v63 = vpop.f32.mrf.mxu1  ;;  %v3718_v0 = vadd.f32 %v3717_v37, %v6542_v8  ;;  %5225 = vmatpush3.bf16.msra.mxu0 %v6141_v18  ;;  %v6155_v37 = vld [vmem:[#allocation11] sm:$0xff]  }
 0x29b   :  { %v3719_v11 = vpop.f32.mrf.mxu0  ;;  %5226 = vmatprep.subr.bf16.mxu0 %v6142_v24 }
 0x29c   :  { %v3760_v12 = vpop.f32.mrf.mxu1  ;;  %v3759_v13 = vadd.f32 %v3758_v63, %v3718_v0  ;;  %v3720_v14 = vadd.f32 %v3719_v11, %v6544_v36  ;;  %v3997_v63 = vld [vmem:[#allocation10] sm:$0x3] }
 0x29d   :  { %v3721_v15 = vpop.f32.mrf.mxu0  ;;  %v4002_v40 = vrot.slane %v3997_v63, %v639_v59  ;;  %v4006_v0 = vrot.slane %v3997_v63, %v643_v62 }
 0x29e   :  { %v3762_v19 = vpop.f32.mrf.mxu1  ;;  %v3761_v21 = vadd.f32 %v3760_v12, %v3720_v14  ;;  %5227 = vmatpush3.bf16.msra.mxu0 %v6143_v25 }
 0x29f   :  { %v3722_v52 = vpop.f32.mrf.mxu0  ;;  %5228 = vmatprep.subr.bf16.mxu0 %v6144_v41 }
 0x2a0   :  { %v3763_v28 = vpop.f32.mrf.mxu1 }
 0x2a2   :  { %5229 = vmatpush3.bf16.msra.mxu0 %v6145_v42 }
 0x2a3   :  { %5230 = vmatprep.subr.bf16.mxu0 %v6146_v43 }
 0x2a6   :  { %5231 = vmatpush3.bf16.msra.mxu0 %v6147_v23 }
 0x2a7   :  { %5232 = vmatprep.subr.bf16.mxu0 %v6148_v45 }
 0x2aa   :  { %5233 = vmatpush3.bf16.msra.mxu0 %v6149_v49 }
 0x2ab   :  { %5234 = vmatprep.subr.bf16.mxu0 %v6150_v50 }
 0x2ae   :  { %5235 = vmatpush3.bf16.msra.mxu0 %v6151_v38 }
 0x2af   :  { %5236 = vmatprep.subr.bf16.mxu0 %v6152_v35 }
 0x2b2   :  { %5237 = vmatpush3.bf16.msra.mxu0 %v6153_v27 }
 0x2b3   :  { %5238 = vmatprep.subr.bf16.mxu0 %v6154_v9 }
 0x2b6   :  { %5239 = vmatpush3.bf16.msra.mxu0 %v6155_v37 }
 0x2d9   :  { %v3799_v30 = vpop.f32.mrf.mxu0 }
 0x2da   :  { %v3840_v16 = vpop.f32.mrf.mxu1  ;;  %v3800_v8 = vadd.f32 %v3799_v30, %v3759_v13 }
 0x2db   :  { %v3801_v17 = vpop.f32.mrf.mxu0 }
 0x2dc   :  { %v3842_v31 = vpop.f32.mrf.mxu1  ;;  %v3841_v32 = vadd.f32 %v3840_v16, %v3800_v8  ;;  %v3802_v39 = vadd.f32 %v3801_v17, %v3761_v21  ;;  %v5207_v16 = vld [vmem:[#allocation13] ss:$0 sm:$0xff] }
 0x2dd   :  { %v3803_v33 = vpop.f32.mrf.mxu0 }
 0x2de   :  { %v3844_v47 = vpop.f32.mrf.mxu1  ;;  %v3843_v55 = vadd.f32 %v3842_v31, %v3802_v39 }
 0x2df   :  { %v3804_v51 = vpop.f32.mrf.mxu0 }
 0x2e0   :  { %v3845_v36 = vpop.f32.mrf.mxu1 }
 0x319   :  { %v3881_v29 = vpop.f32.mrf.mxu0 }
 0x31a   :  { %v3922_v54 = vpop.f32.mrf.mxu1  ;;  %v3882_v56 = vadd.f32 %v3881_v29, %v3841_v32 }
 0x31b   :  { %v3883_v57 = vpop.f32.mrf.mxu0 }
 0x31c   :  { %v3924_v58 = vpop.f32.mrf.mxu1  ;;  %v3884_v60 = vadd.f32 %v3883_v57, %v3843_v55  ;;  %v3923_v1 = vadd.f32 %v3922_v54, %v3882_v56 }
 0x31d   :  { %v3885_v44 = vpop.f32.mrf.mxu0 }
 0x31e   :  { %v3926_v61 = vpop.f32.mrf.mxu1  ;;  %v3925_v46 = vadd.f32 %v3924_v58, %v3884_v60  ;;  %v3931_v6 = vpack.c.bf16 %v3923_v1, %v3923_v1 }
 0x31f   :  { %v3886_v22 = vpop.f32.mrf.mxu0 }
 0x320   :  { %v3927_v2 = vpop.f32.mrf.mxu1  ;;  %v3932_v3 = vpack.c.bf16 %v3925_v46, %v3925_v46 }
 0x322   :  { %4402 = vmatprep.mubr.bf16.mxu1 %v3932_v3 }
 0x323   :  { %4403 = vmatmul.mubr.bf16.vlgmr.msra.gmra.mxu1 %v3931_v6 }
 0x359   :  { %v4363_v48 = vpop.f32.mrf.mxu0 }
 0x35a   :  { %v4364_v10 = vadd.f32 %v4363_v48, %v4002_v40 }
 0x35b   :  { %v4365_v7 = vpop.f32.mrf.mxu0 }
 0x35c   :  { %v4366_v12 = vadd.f32 %v4365_v7, %v4006_v0 }
 0x35d   :  { %v4367_v4 = vpop.f32.mrf.mxu0 }
 0x35f   :  { %v4368_v5 = vpop.f32.mrf.mxu0 }
 0x3e3   :  { %v4404_v11 = vpop.f32.mrf.mxu1 }
 0x3e4   :  { %v4405_v13 = vadd.f32 %v4404_v11, %v4364_v10 }
 0x3e5   :  { %v4406_v14 = vpop.f32.mrf.mxu1 }
 0x3e6   :  { %v4407_v15 = vadd.f32 %v4406_v14, %v4366_v12  ;;  %v4411_v19 = vmax.f32 %v4405_v13, 0.0 }
 0x3e7   :  { %v4408_v20 = vpop.f32.mrf.mxu1 }
 0x3e8   :  { %v4412_v21 = vmax.f32 %v4407_v15, 0.0  ;;  %v4413_v28 = vpack.c.bf16 %v4411_v19, %v4411_v19 }
 0x3e9   :  { %v4409_v26 = vpop.f32.mrf.mxu1 }
 0x3ea   :  { %v4414_v52 = vpack.c.bf16 %v4412_v21, %v4412_v21 }
 0x3ec   :  { %4582 = vmatprep.mubr.bf16.mxu0 %v4414_v52 }
 0x3ed   :  { %4583 = vmatmul.mubr.bf16.vlgmr.msra.gmra.mxu0 %v4413_v28 }
 0x4ad   :  { %v5240_v30 = vpop.f32.mrf.mxu0 }
 0x4af   :  { %v5241_v59 = vpop.f32.mrf.mxu0 }
 0x4b0   :  { %v5242_v8 = vadd.f32 %v5241_v59, %v5240_v30 }
 0x4b1   :  { %v5243_v53 = vpop.f32.mrf.mxu0 }
 0x4b2   :  { %v4585_v62 = vadd.f32 %v5242_v8, %v5207_v16 }
 0x4b3   :  { %v5244_v17 = vpop.f32.mrf.mxu0 }
 0x4b4   :  { %v4590_v31 = vsub.f32 0.0, %v4585_v62 }
 0x4b6   :  { %v4591_v32 = vmul.f32 1.442695, %v4590_v31 }
 0x4b8   :  { %6156 = vpow2.f32 %v4591_v32 }
 0x4c5   :  { %v6157_v33 = vpop.eup %6156 }
 0x4c6   :  { %v4593_v47 = vadd.f32 1.0, %v6157_v33 }
 0x4c8   :  { %6158 = vrcp.f32 %v4593_v47 }
 0x4d5   :  { %v6159_v51 = vpop.eup %6158 }
 0x4d6   :  { %4596 = vst [vmem:[#allocation14] sm:$0xff] %v6159_v51 }
 0x4d7   :  { %6312 = shalt.err (!%p6309_p11)
}
 0x4d8   :  { %4606 = dma.vmem_to_hbm [thread:$0]  %s4604_s6, 128, %s6564_s7, [#allocation4]  }
 0x4d9   :  { %6329 = dma.done.wait [#allocation4], 128  }
 0x4da   :  { %6330 = vsyncadd [#allocation4], 4294967168 }
 0x4db   :  { %4610 = vsyncpa [#allocation3], 1 }
 0x4dc   :  { %4611 = vsyncpa [#allocation6], 1 }
 0x4dd   :  { %4612 = vsyncpa [#allocation9], 1 }
 0x4de   :  { %4613 = vsyncpa [#allocation12], 1 }
 0x4df   :  { %4614 = vsyncpa [#allocation4], 1 }

</bundles_post_ra>
